<compile_context>
chip_gen: v7x
topology: tpu7x:2x2x1
jax: 0.10.0
libtpu: 0.0.40
codegen_flags: <defaults>
</compile_context>

<pallas_src>
import jax
import jax.numpy as jnp
import numpy as np
from jax.experimental import pallas as pl
from jax.experimental.pallas import tpu as pltpu


def _category_head_kernel(x_ref, w_ref, b_ref, m_ref, o_ref, acc_ref):
    """x_ref: (bm, bk) bf16 flattened-image tile
       w_ref: (bk, Np) bf16 classifier-weight tile (K-tiled)
       b_ref: (1, Np)  f32 bias; padded classes hold -1e30 so they vanish
       m_ref: (Np, 128) f32 membership matrix (col 0 = category, col 1 = rest)
       o_ref: (bm, 128) f32 lane-dense padded output (cols 0..1 are real)
       acc_ref: (bm, Np) f32 logit accumulator, persistent across K steps."""
    k = pl.program_id(1)

    @pl.when(k == 0)
    def _init():
        acc_ref[...] = jnp.zeros_like(acc_ref)

    # bf16 operands, f32 accumulation on the MXU.
    acc_ref[...] += jnp.dot(x_ref[...], w_ref[...],
                            preferred_element_type=jnp.float32)

    @pl.when(k == pl.num_programs(1) - 1)
    def _finalize():
        logits = acc_ref[...] + b_ref[...]                 # (bm, Np); pad -> -1e30
        mx = jnp.max(logits, axis=-1, keepdims=True)
        e = jnp.exp(logits - mx)                           # padded classes -> 0
        z = jnp.sum(e, axis=-1, keepdims=True)
        # Softmax denominator: EUP approx reciprocal + one Newton step.
        r = pl.reciprocal(z, approx=True)
        r = r * (2.0 - z * r)
        # (softmax(logits) @ M) == (e @ M) * (1/z): aggregate first (MXU),
        # then normalize the small lane-dense tile.
        agg = jnp.dot(e, m_ref[...], preferred_element_type=jnp.float32)
        o_ref[...] = (agg * r).astype(o_ref.dtype)


def category_classifier(images, w_cls, b_cls, category_indices, rest_indices,
                        *, block_k=256):
    """images: (B, C, H, W) float32. Returns (B, 2) = [p_category, p_rest]."""
    B, C, H, W = images.shape
    F = C * H * W
    Fw, N = w_cls.shape
    assert Fw == F

    OUT_PAD = 128                                 # lane-dense padded output width
    n_pad = ((N + 127) // 128) * 128              # pad class axis to lane multiple

    if F % block_k != 0:
        block_k = F
    block_b = B if B <= 128 else 128
    assert B % block_b == 0

    # Heavy operands to bf16 (halves HBM bytes; kernel accumulates in f32).
    x = images.reshape(B, F).astype(jnp.bfloat16)
    w = jnp.zeros((F, n_pad), jnp.bfloat16).at[:, :N].set(
        w_cls.astype(jnp.bfloat16))
    # Padded classes get a huge negative bias so they contribute exp(.) == 0.
    bias = jnp.full((1, n_pad), -1e30, jnp.float32).at[0, :N].set(
        b_cls.astype(jnp.float32))
    # Membership matrix: column 0 sums category classes, column 1 sums the rest;
    # remaining 126 columns (and padded class rows) are zero.
    member = jnp.zeros((n_pad, OUT_PAD), jnp.float32)
    member = member.at[jnp.asarray(category_indices), 0].set(1.0)
    member = member.at[jnp.asarray(rest_indices), 1].set(1.0)

    out = pl.pallas_call(
        _category_head_kernel,
        out_shape=jax.ShapeDtypeStruct((B, OUT_PAD), jnp.float32),
        grid_spec=pltpu.PrefetchScalarGridSpec(
            num_scalar_prefetch=0,
            grid=(B // block_b, F // block_k),
            in_specs=[
                pl.BlockSpec((block_b, block_k), lambda i, k: (i, k)),
                pl.BlockSpec((block_k, n_pad), lambda i, k: (k, 0)),
                pl.BlockSpec((1, n_pad), lambda i, k: (0, 0)),
                pl.BlockSpec((n_pad, OUT_PAD), lambda i, k: (0, 0)),
            ],
            out_specs=pl.BlockSpec((block_b, OUT_PAD), lambda i, k: (i, 0)),
            scratch_shapes=[pltpu.VMEM((block_b, n_pad), jnp.float32)],
        ),
        compiler_params=pltpu.CompilerParams(
            dimension_semantics=("parallel", "arbitrary"),
            vmem_limit_bytes=32 * 1024 * 1024,
        ),
    )(x, w, bias, member)

    return out[:, :2]


if __name__ == "__main__":
    B, C, H, W = 2, 4, 16, 16
    F = C * H * W
    N_CLASSES = 1000

    key = jax.random.PRNGKey(0)
    k_img, k_w, k_b = jax.random.split(key, 3)

    images = jax.random.normal(k_img, (B, C, H, W), dtype=jnp.float32)
    # TODO(synk): pretrained ViT-B/16 (vit_b_16 + ViT_B_16_Weights) and its
    # preprocessing transforms are replaced by a synthetic linear classifier head.
    w_cls = jax.random.normal(k_w, (F, N_CLASSES), dtype=jnp.float32) * 0.02
    b_cls = jax.random.normal(k_b, (N_CLASSES,), dtype=jnp.float32) * 0.01

    # TODO(synk): imagenet_categories_synset.csv lookup replaced by a synthetic
    # deterministic split (every 10th ImageNet class is the target category).
    category_indices = np.arange(0, N_CLASSES, 10, dtype=np.int32)
    rest_indices = np.setdiff1d(np.arange(N_CLASSES, dtype=np.int32),
                                category_indices)

    probs = category_classifier(images, w_cls, b_cls,
                                category_indices, rest_indices)
    probs = jax.block_until_ready(probs)

    # Sanity checks: shape, rows sum to 1, matches pure-JAX reference.
    assert probs.shape == (B, 2)
    np.testing.assert_allclose(np.asarray(probs.sum(axis=1)),
                               np.ones(B, dtype=np.float32),
                               rtol=1e-5, atol=1e-5)

    def ref(images, w_cls, b_cls):
        x = images.reshape(B, F)
        # Match the kernel's bf16 operand rounding (accumulation stays f32).
        logits = (x.astype(jnp.bfloat16).astype(jnp.float32)
                  @ w_cls.astype(jnp.bfloat16).astype(jnp.float32)) + b_cls
        p = jax.nn.softmax(logits, axis=1)
        p_cat = p[:, category_indices].sum(axis=1, keepdims=True)
        p_rest = p[:, rest_indices].sum(axis=1, keepdims=True)
        return jnp.concatenate([p_cat, p_rest], axis=1)

    np.testing.assert_allclose(np.asarray(probs),
                               np.asarray(ref(images, w_cls, b_cls)),
                               rtol=1e-4, atol=1e-5)

    print("KERNEL_OK")
</pallas_src>

<mosaic_0001>
module attributes {stable_mosaic.version = 11 : i64} {
  func.func @_category_head_kernel(%arg0: i32, %arg1: i32, %arg2: memref<2x256xbf16, #tpu.memory_space<vmem>>, %arg3: memref<256x1024xbf16, #tpu.memory_space<vmem>>, %arg4: memref<1x1024xf32, #tpu.memory_space<vmem>>, %arg5: memref<1024x128xf32, #tpu.memory_space<vmem>>, %arg6: memref<2x128xf32, #tpu.memory_space<vmem>>, %arg7: memref<2x1024xf32, #tpu.memory_space<vmem>>) attributes {dimension_semantics = [#tpu.dimension_semantics<parallel>, #tpu.dimension_semantics<arbitrary>], iteration_bounds = array<i64: 1, 4>, scalar_prefetch = 0 : i64, scratch_operands = 1 : i64, tpu.core_type = #tpu.core_type<tc>, window_params = [{transform_indices = @transform_0, window_bounds = array<i64: 2, 256>}, {transform_indices = @transform_1, window_bounds = array<i64: 256, 1024>}, {pipeline_mode = #tpu.pipeline_mode<synchronous>, transform_indices = @transform_2, window_bounds = array<i64: 1, 1024>}, {pipeline_mode = #tpu.pipeline_mode<synchronous>, transform_indices = @transform_3, window_bounds = array<i64: 1024, 128>}, {transform_indices = @transform_4, window_bounds = array<i64: 2, 128>}]} {
    %c0_i32 = arith.constant 0 : i32
    %0 = arith.cmpi eq, %arg1, %c0_i32 : i32
    %1 = arith.extui %0 : i1 to i32
    %c0_i32_0 = arith.constant 0 : i32
    %2 = arith.cmpi ne, %1, %c0_i32_0 : i32
    scf.if %2 {
      %cst_9 = arith.constant 0.000000e+00 : f32
      %12 = vector.broadcast %cst_9 : f32 to vector<2x1024xf32>
      %c0_10 = arith.constant 0 : index
      %c0_11 = arith.constant 0 : index
      %13 = vector.load %arg7[%c0_10, %c0_11] : memref<2x1024xf32, #tpu.memory_space<vmem>>, vector<2x1024xf32>
      tpu.vector_store %arg7[%c0_10, %c0_11], %12 {strides = array<i32>} : memref<2x1024xf32, #tpu.memory_space<vmem>>, vector<2x1024xf32>,
    } else {
    }
    %c0 = arith.constant 0 : index
    %c0_1 = arith.constant 0 : index
    %3 = vector.load %arg7[%c0, %c0_1] : memref<2x1024xf32, #tpu.memory_space<vmem>>, vector<2x1024xf32>
    %c0_2 = arith.constant 0 : index
    %c0_3 = arith.constant 0 : index
    %4 = vector.load %arg2[%c0_2, %c0_3] : memref<2x256xbf16, #tpu.memory_space<vmem>>, vector<2x256xbf16>
    %c0_4 = arith.constant 0 : index
    %c0_5 = arith.constant 0 : index
    %5 = vector.load %arg3[%c0_4, %c0_5] : memref<256x1024xbf16, #tpu.memory_space<vmem>>, vector<256x1024xbf16>
    %cst = arith.constant dense<0.000000e+00> : vector<2x1024xf32>
    %6 = tpu.matmul %4, %5, %cst {dimension_numbers = #tpu.dot_dimension_numbers<[1], [0], [0], [1], [0, 0, 1, 1], [], []>} : vector<2x256xbf16>, vector<256x1024xbf16>, vector<2x1024xf32> -> vector<2x1024xf32>
    %7 = arith.addf %3, %6 : vector<2x1024xf32>
    %c0_6 = arith.constant 0 : index
    %c0_7 = arith.constant 0 : index
    %8 = vector.load %arg7[%c0_6, %c0_7] : memref<2x1024xf32, #tpu.memory_space<vmem>>, vector<2x1024xf32>
    tpu.vector_store %arg7[%c0_6, %c0_7], %7 {strides = array<i32>} : memref<2x1024xf32, #tpu.memory_space<vmem>>, vector<2x1024xf32>,
    %c3_i32 = arith.constant 3 : i32
    %9 = arith.cmpi eq, %arg1, %c3_i32 : i32
    %10 = arith.extui %9 : i1 to i32
    %c0_i32_8 = arith.constant 0 : i32
    %11 = arith.cmpi ne, %10, %c0_i32_8 : i32
    scf.if %11 {
      %c0_9 = arith.constant 0 : index
      %c0_10 = arith.constant 0 : index
      %12 = vector.load %arg7[%c0_9, %c0_10] : memref<2x1024xf32, #tpu.memory_space<vmem>>, vector<2x1024xf32>
      %c0_11 = arith.constant 0 : index
      %c0_12 = arith.constant 0 : index
      %13 = vector.load %arg4[%c0_11, %c0_12] : memref<1x1024xf32, #tpu.memory_space<vmem>>, vector<1x1024xf32>
      %14 = vector.broadcast %13 : vector<1x1024xf32> to vector<2x1024xf32>
      %15 = arith.addf %12, %14 : vector<2x1024xf32>
      %cst_13 = arith.constant dense<0xFF800000> : vector<2xf32>
      %16 = vector.multi_reduction <maximumf>, %15, %cst_13 [1] : vector<2x1024xf32> to vector<2xf32>
      %17 = vector.shape_cast %16 : vector<2xf32> to vector<2x1xf32>
      %18 = vector.broadcast %17 : vector<2x1xf32> to vector<2x1024xf32>
      %19 = arith.subf %15, %18 : vector<2x1024xf32>
      %20 = math.exp %19 : vector<2x1024xf32>
      %cst_14 = arith.constant dense<0.000000e+00> : vector<2xf32>
      %21 = vector.multi_reduction <add>, %20, %cst_14 [1] : vector<2x1024xf32> to vector<2xf32>
      %22 = vector.shape_cast %21 : vector<2xf32> to vector<2x1xf32>
      %23 = tpu.reciprocal %22 {approx = true} : vector<2x1xf32> -> vector<2x1xf32>
      %24 = arith.mulf %22, %23 : vector<2x1xf32>
      %cst_15 = arith.constant 2.000000e+00 : f32
      %25 = vector.broadcast %cst_15 : f32 to vector<2x1xf32>
      %26 = arith.subf %25, %24 : vector<2x1xf32>
      %27 = arith.mulf %23, %26 : vector<2x1xf32>
      %c0_16 = arith.constant 0 : index
      %c0_17 = arith.constant 0 : index
      %28 = vector.load %arg5[%c0_16, %c0_17] : memref<1024x128xf32, #tpu.memory_space<vmem>>, vector<1024x128xf32>
      %cst_18 = arith.constant dense<0.000000e+00> : vector<2x128xf32>
      %29 = tpu.matmul %20, %28, %cst_18 {dimension_numbers = #tpu.dot_dimension_numbers<[1], [0], [0], [1], [0, 0, 1, 1], [], []>} : vector<2x1024xf32>, vector<1024x128xf32>, vector<2x128xf32> -> vector<2x128xf32>
      %30 = vector.broadcast %27 : vector<2x1xf32> to vector<2x128xf32>
      %31 = arith.mulf %29, %30 : vector<2x128xf32>
      %c0_19 = arith.constant 0 : index
      %c0_20 = arith.constant 0 : index
      %32 = vector.load %arg6[%c0_19, %c0_20] : memref<2x128xf32, #tpu.memory_space<vmem>>, vector<2x128xf32>
      tpu.vector_store %arg6[%c0_19, %c0_20], %31 {strides = array<i32>} : memref<2x128xf32, #tpu.memory_space<vmem>>, vector<2x128xf32>,
    } else {
    }
    return
  }
  func.func @transform_0(%arg0: i32, %arg1: i32) -> (i32, i32) {
    %c0_i32 = arith.constant 0 : i32
    return %arg0, %arg1 : i32, i32
  }
  func.func @transform_1(%arg0: i32, %arg1: i32) -> (i32, i32) {
    %c0_i32 = arith.constant 0 : i32
    %c0_i32_0 = arith.constant 0 : i32
    return %arg1, %c0_i32 : i32, i32
  }
  func.func @transform_2(%arg0: i32, %arg1: i32) -> (i32, i32) {
    %c0_i32 = arith.constant 0 : i32
    %c0_i32_0 = arith.constant 0 : i32
    %c0_i32_1 = arith.constant 0 : i32
    return %c0_i32, %c0_i32_0 : i32, i32
  }
  func.func @transform_3(%arg0: i32, %arg1: i32) -> (i32, i32) {
    %c0_i32 = arith.constant 0 : i32
    %c0_i32_0 = arith.constant 0 : i32
    %c0_i32_1 = arith.constant 0 : i32
    return %c0_i32, %c0_i32_0 : i32, i32
  }
  func.func @transform_4(%arg0: i32, %arg1: i32) -> (i32, i32) {
    %c0_i32 = arith.constant 0 : i32
    %c0_i32_0 = arith.constant 0 : i32
    return %arg0, %c0_i32 : i32, i32
  }
}

</mosaic_0001>

<bundles_post_ra>
// kernel: tpu_custom_call.1
= control target key start
LH: loop header
LB: loop body
LE: loop exit
PB: predicated region body
PF: predicated region fallthrough
CT: control target
= control target key end

     0   :  { %9 = vsyncpa [#allocation4], 0  ;;  %s3312_s0 = inlined_call_operand.hbm [shape: bf16[2,1024], index: 0, kind: input, shape index: {}]   ;;  %s3313_s1 = inlined_call_operand.hbm [shape: bf16[1024,1024], index: 1, kind: input, shape index: {}]   ;;  %s3314_s2 = inlined_call_operand.hbm [shape: f32[1,1024], index: 2, kind: input, shape index: {}]   ;;  %s3315_s3 = inlined_call_operand.hbm [shape: f32[1024,128], index: 3, kind: input, shape index: {}]   ;;  %s3316_s4 = inlined_call_operand.hbm [shape: f32[2,128], index: 4, kind: output, shape index: {}]  }
   0x1   :  { %11 = vsyncpa [#allocation4 + $0x1], 0 }
   0x2   :  { %12 = vsyncpa [#allocation7], 0 }
   0x3   :  { %14 = vsyncpa [#allocation7 + $0x1], 0 }
   0x4   :  { %15 = vsyncpa [#allocation10], 0 }
   0x5   :  { %16 = vsyncpa [#allocation5], 0  ;;  %s2825_s15 = smov 0   ;;  %s2827_s16 = smov 0  }
   0x6   :  { %s2829_s17 = smov 0   ;;  %s2831_s18 = smov 0  }
   0x7   :  { %s2833_s19 = smov 0   ;;  %s2835_s20 = smov 0  }
   0x8 LB: > { %s2854_s21 = sadd.s32 4294967295, %s2785_s20   ;;  %p56_p0 = scmp.ne.s32.totalorder %s2769_s16, %s2765_s15  ;;  %s2785_s20 = sphi %s2835_s20, %s22_s20   ;;  %s2781_s19 = sphi %s2833_s19, %s3334_s19   ;;  %s2777_s18 = sphi %s2831_s18, %s3333_s18   ;;  %s2773_s17 = sphi %s2829_s17, %s3332_s17   ;;  %s2769_s16 = sphi %s2827_s16, %s3331_s16   ;;  %s2765_s15 = sphi %s2825_s15, %s3330_s15  }
   0x9   : > { %p3317_p1 = scmp.eq.s32.totalorder %s2854_s21, 0  ;;  %p2053_p2 = scmp.ge.s32.totalorder %s2785_s20, 1 }
   0xa   : > { %p161_p3 = scmp.lt.s32.totalorder %s2785_s20, 5  ;;  %s2787_s24 = smov [#allocation8]  }
   0xb   : > { %p2862_p4 = por %p3317_p1, %p56_p0  ;;  %s174_s25 = sshll.u32 %s2787_s24, 4  ;;  %s175_s25 = int_to_ptr.vmem [resolvable:$true] %s174_s25 }
   0xc   : > { %p2866_p5 = pnand %p2053_p2, %p161_p3  ;;  %s2788_s26 = smov [#allocation9]  }
   0xd   : > { %s3320_s22 = scalar_select %p2862_p4, 1, 0 }
   0xe   : > { %s3321_s23 = scalar_select %p2866_p5, 1, 0 }
   0xf   : > { %p2491_p6 = pneg %p2866_p5  ;;  %s184_s27 = sshll.u32 %s2788_s26, 4  ;;  %s2878_s27 = int_to_ptr.vmem [resolvable:$true] %s184_s27 }
  0x10   : > { %s2577_s5 = scalar_lea.hbm %s3314_s2, 128 }
  0x11   : > { %p2874_p7 = pnand %p2491_p6, %p3317_p1  ;;  %p2578_p8 = scmp.ne.s32.totalorder %s3314_s2, %s2577_s5 }
  0x12   : > { %p2584_p12 = scmp.lt.u32.totalorder %s2577_s5, %s3314_s2 }
  0x13   : > { %p2579_p9 = pneg %p2874_p7 }
  0x15   : > { %p2580_p10 = pnand %p2579_p9, %p2578_p8 }
  0x17   : > { %p2581_p11 = pneg %p2580_p10 }
  0x19   : > { %p2586_p13 = pnand %p2584_p12, %p2581_p11 }
  0x1b   : > { %2589 = shalt.err (!%p2586_p13)
}
  0x1c   : > { %s2590_s10 = scalar_lea.vmem %s175_s25, 128  ;;  %p2598_p6 = scmp.lt.s32.totalorder %s175_s25, %s175_s25 }
  0x1d   : > { %p2591_p0 = scmp.ne.s32.totalorder %s175_s25, %s2590_s10  ;;  %p2599_p1 = scmp.lt.s32.totalorder %s2590_s10, %s2590_s10 }
  0x1f   : > { %p2593_p2 = pnand %p2591_p0, %p2579_p9  ;;  %p2600_p4 = por %p2599_p1, %p2598_p6 }
  0x21   : > { %p2594_p3 = pneg %p2593_p2 }
  0x23   : > { %p2601_p5 = pnand %p2600_p4, %p2594_p3 }
  0x25   : > { %2604 = shalt.err (!%p2601_p5)
}
  0x26   : > { %2494 = dma.hbm_to_vmem [thread:$0]  (!%p2874_p7), %s3314_s2, 128, %s175_s25, [#allocation7]  }
  0x27   : > { %s2605_s15 = scalar_lea.hbm %s3315_s3, 16384 }
  0x28   : > { %p2606_p8 = scmp.ne.s32.totalorder %s3315_s3, %s2605_s15  ;;  %p2612_p5 = scmp.lt.u32.totalorder %s2605_s15, %s3315_s3 }
  0x2a   : > { %p2608_p1 = pnand %p2606_p8, %p2579_p9 }
  0x2c   : > { %p2609_p4 = pneg %p2608_p1 }
  0x2e   : > { %p2614_p10 = pnand %p2612_p5, %p2609_p4 }
  0x30   : > { %2617 = shalt.err (!%p2614_p10)
}
  0x31   : > { %s2618_s25 = scalar_lea.vmem %s2878_s27, 16384  ;;  %p2626_p0 = scmp.lt.s32.totalorder %s2878_s27, %s2878_s27 }
  0x32   : > { %p2619_p11 = scmp.ne.s32.totalorder %s2878_s27, %s2618_s25  ;;  %p2627_p2 = scmp.lt.s32.totalorder %s2618_s25, %s2618_s25 }
  0x34   : > { %p2621_p12 = pnand %p2619_p11, %p2579_p9  ;;  %p2628_p3 = por %p2627_p2, %p2626_p0 }
  0x36   : > { %p2622_p13 = pneg %p2621_p12 }
  0x38   : > { %p2629_p6 = pnand %p2628_p3, %p2622_p13 }
  0x3a   : > { %2632 = shalt.err (!%p2629_p6)
}
  0x3b   : > { %s2789_s5 = smov 128   ;;  %s2790_s6 = smov 8  }
  0x3c   : > { %2497 = dma.hbm_to_vmem [thread:$0]  (!%p2874_p7), %s3315_s3, 16384, %s2878_s27, [#allocation10], %s2789_s5, %s2789_s5, %s2790_s6  }
  0x3d   : > { %s31_s9 = sadd.s32 1, %s2781_s19  ;;  %s43_s10 = sadd.s32 1, %s2773_s17 }
  0x3e   : > { %p32_p9 = scmp.ge.s32.totalorder %s31_s9, 4  ;;  %p50_p8 = scmp.ne.s32.totalorder %s2773_s17, %s2769_s16 }
  0x3f   : > { %p51_p1 = scmp.eq.s32.totalorder %s2785_s20, 0  ;;  %p2507_p4 = scmp.lt.s32.totalorder %s2785_s20, 4 }
  0x40   : > { %s3336_s9 = smov (%p32_p9, %s31_s9), 0  ;;  %s2936_s11 = sand.u32 1, %s2773_s17  }
  0x41   : > { %p52_p5 = por %p51_p1, %p50_p8  ;;  %s39_s28 = ssub.s32 %s2781_s19, %s3336_s9 }
  0x42   : > { %p41_p10 = scmp.eq.s32.totalorder %s39_s28, 0  ;;  %s2057_s27 = sshll.u32 %s2936_s11, 1 }
  0x43   : > { %s2204_s12 = sshll.u32 %s2781_s19, 5  ;;  %s202_s26 = scalar_lea.vmem [#allocation3], %s2057_s27 }
  0x44   : > { %s2943_s13 = scalar_select %p41_p10, %s2773_s17, %s43_s10  }
  0x45   : > { %s2948_s24 = scalar_lea.hbm %s3312_s0, %s2204_s12  ;;  %s212_s29 = sshll.u32 %s202_s26, 4  ;;  %s2950_s29 = int_to_ptr.vmem [resolvable:$true] %s212_s29 }
  0x46   : > { %p2954_p7 = pnand %p2507_p4, %p52_p5  ;;  %s2060_s25 = sshll.u32 %s2936_s11, 10 }
  0x47   : > { %s2206_s5 = sshll.u32 %s2781_s19, 14  ;;  %s199_s6 = scalar_lea.sflag [#allocation4], %s2936_s11 }
  0x48   : > { %s2633_s7 = scalar_lea.hbm %s2948_s24, 32  ;;  %p2635_p12 = pneg %p2954_p7 }
  0x49   : > { %p2634_p11 = scmp.ne.s32.totalorder %s2948_s24, %s2633_s7  ;;  %s2638_s28 = scalar_lea.hbm %s3312_s0, 128 }
  0x4a   : > { %p2639_p2 = scmp.lt.u32.totalorder %s2948_s24, %s3312_s0  ;;  %p2640_p3 = scmp.lt.u32.totalorder %s2638_s28, %s2633_s7 }
  0x4b   : > { %p2636_p13 = pnand %p2635_p12, %p2634_p11  ;;  %p2642_p9 = scmp.lt.u32.totalorder %s2633_s7, %s2948_s24 }
  0x4c   : > { %p2641_p6 = por %p2640_p3, %p2639_p2 }
  0x4d   : > { %p2637_p0 = pneg %p2636_p13 }
  0x4e   : > { %p2643_p8 = por %p2642_p9, %p2641_p6 }
  0x50   : > { %p2644_p1 = pnand %p2643_p8, %p2637_p0 }
  0x52   : > { %2647 = shalt.err (!%p2644_p1)
}
  0x53   : > { %s2648_s14 = scalar_lea.vmem %s2950_s29, 32  ;;  %s2791_s15 = smov [#allocation3]  }
  0x54   : > { %p2649_p4 = scmp.ne.s32.totalorder %s2950_s29, %s2648_s14  ;;  %s2653_s26 = sshll.u32 %s2791_s15, 4  ;;  %s2654_s26 = int_to_ptr.vmem [resolvable:$false] %s2653_s26 }
  0x55   : > { %s2655_s8 = scalar_lea.vmem %s2654_s26, 64  ;;  %p2656_p11 = scmp.lt.s32.totalorder %s2950_s29, %s2654_s26 }
  0x56   : > { %p2651_p5 = pnand %p2649_p4, %p2635_p12  ;;  %p2657_p13 = scmp.lt.s32.totalorder %s2655_s8, %s2648_s14 }
  0x58   : > { %p2652_p10 = pneg %p2651_p5  ;;  %p2658_p2 = por %p2657_p13, %p2656_p11 }
  0x5a   : > { %p2659_p3 = pnand %p2658_p2, %p2652_p10 }
  0x5c   : > { %2662 = shalt.err (!%p2659_p3)
}
  0x5d   : > { %2501 = dma.hbm_to_vmem [thread:$0]  (!%p2954_p7), %s2948_s24, 32, %s2950_s29, %s199_s6  }
  0x5e   : > { %s223_s7 = scalar_lea.vmem [#allocation6], %s2060_s25  ;;  %s219_s28 = sand.u32 1, %s2785_s20  }
  0x5f   : > { %s231_s10 = sshll.u32 %s223_s7, 4  ;;  %s2996_s14 = scalar_lea.hbm %s3313_s1, %s2206_s5  ;;  %s2989_s10 = int_to_ptr.vmem [resolvable:$true] %s231_s10 }
  0x60   : > { %s2998_s15 = scalar_lea.sflag [#allocation7], %s219_s28  ;;  %s2663_s26 = scalar_lea.hbm %s2996_s14, 16384 }
  0x61   : > { %p2664_p0 = scmp.ne.s32.totalorder %s2996_s14, %s2663_s26  ;;  %s2668_s29 = scalar_lea.hbm %s3313_s1, 65536 }
  0x62   : > { %p2669_p8 = scmp.lt.u32.totalorder %s2996_s14, %s3313_s1  ;;  %p2670_p1 = scmp.lt.u32.totalorder %s2668_s29, %s2663_s26 }
  0x63   : > { %p2666_p6 = pnand %p2664_p0, %p2635_p12  ;;  %p2672_p5 = scmp.lt.u32.totalorder %s2663_s26, %s2996_s14 }
  0x64   : > { %p2671_p4 = por %p2670_p1, %p2669_p8 }
  0x65   : > { %p2667_p9 = pneg %p2666_p6 }
  0x66   : > { %p2673_p10 = por %p2672_p5, %p2671_p4 }
  0x68   : > { %p2674_p11 = pnand %p2673_p10, %p2667_p9 }
  0x6a   : > { %2677 = shalt.err (!%p2674_p11)
}
  0x6b   : > { %s2678_s5 = scalar_lea.vmem %s2989_s10, 16384  ;;  %s2792_s8 = smov [#allocation6]  }
  0x6c   : > { %p2679_p13 = scmp.ne.s32.totalorder %s2989_s10, %s2678_s5  ;;  %s2683_s7 = sshll.u32 %s2792_s8, 4  ;;  %s2684_s7 = int_to_ptr.vmem [resolvable:$false] %s2683_s7 }
  0x6d   : > { %s2685_s28 = scalar_lea.vmem %s2684_s7, 32768  ;;  %p2686_p0 = scmp.lt.s32.totalorder %s2989_s10, %s2684_s7 }
  0x6e   : > { %p2681_p2 = pnand %p2679_p13, %p2635_p12  ;;  %p2687_p6 = scmp.lt.s32.totalorder %s2685_s28, %s2678_s5 }
  0x70   : > { %p2682_p3 = pneg %p2681_p2  ;;  %p2688_p8 = por %p2687_p6, %p2686_p0 }
  0x72   : > { %p2689_p1 = pnand %p2688_p8, %p2682_p3 }
  0x74   : > { %2692 = shalt.err (!%p2689_p1)
}
  0x75   : > { %s2793_s27 = smov 512   ;;  %s2794_s12 = smov 32  }
  0x76   : > { %2504 = dma.hbm_to_vmem [thread:$0]  (!%p2954_p7), %s2996_s14, 16384, %s2989_s10, %s2998_s15, %s2793_s27, %s2793_s27, %s2794_s12  }
  0x77   : > { %p3324_p12 = scmp.ne.s32.totalorder %s3321_s23, 0 }
  0x78   : > { %s245_s26 = sand.u32 (!%p3324_p12), 1, %s2769_s16   ;;  %p3325_p9 = scmp.ne.s32.totalorder (!%p3324_p12), %s3320_s22, 0 }
  0x79   : > { %243 = sbr.rel (%p3324_p12) target bundleno = 967 (0x3c7), region = 36  ;;  %s2065_s11 = sshll.u32 (!%p3324_p12), %s245_s26, 1 }
  0x7a   : > { %s246_s24 = scalar_lea.sflag (!%p3324_p12), [#allocation4], %s245_s26  ;;  %s3027_s29 = scalar_lea.vmem (!%p3324_p12), [#allocation3], %s2065_s11 }
  0x80   : > { %2744 = dma.done.wait (%p3325_p9), %s246_s24, 32  }
  0x81   : > { %2746 = vsyncadd (%p3325_p9), %s246_s24, 4294967264  ;;  %s254_s25 = sand.u32 1, %s2854_s21   ;;  %s2066_s30 = sshll.u32 %s245_s26, 10 }
  0x82   : > { %s255_s10 = scalar_lea.sflag [#allocation7], %s254_s25  ;;  %s3034_s14 = scalar_lea.vmem [#allocation6], %s2066_s30 }
  0x83   : > { %2748 = dma.done.wait (%p3325_p9), %s255_s10, 16384  }
  0x84   : > { %2750 = vsyncadd (%p3325_p9), %s255_s10, 4294950912  ;;  %p3326_p7 = scmp.eq.s32.totalorder %s2854_s21, 0 }
  0x86   : > { %2752 = dma.done.wait (%p3326_p7), [#allocation7], 128   ;;  %p3327_p4 = pmov %p3326_p7 }
  0x88   : > { %2754 = vsyncadd (%p3327_p4), [#allocation7], 4294967168  ;;  %p3328_p5 = pmov %p3327_p4 }
  0x89   : > { %p3329_p10 = pmov %p3327_p4 }
  0x8a   : > { %2756 = dma.done.wait (%p3328_p5), [#allocation10], 16384  }
  0x8b   : > { %2758 = vsyncadd (%p3329_p10), [#allocation10], 4294950912  ;;  %p2069_p11 = scmp.ne.s32.totalorder %s2777_s18, 0 }
  0x8c   : > { %v2795_v0 = vmov (!%p2069_p11), 0.0  }
  0x8d   : > { %296 = sbr.rel (%p2069_p11) target bundleno = 148 (0x94), region = 56  ;;  %297 = vst [vmem:[#allocation2] sm:$0xff] (!%p2069_p11), %v2795_v0  ;;  %298 = vst [vmem:[#allocation2 + $0x8] sm:$0xff] (!%p2069_p11), %v2795_v0 }
  0x94 PF: > { %v302_v1 = vld [vmem:[%s3034_s14] sm:$0xff]  ;;  %v303_v3 = vld [vmem:[%s3034_s14 + $0x8] sm:$0xff]  ;;  %v2796_v36 = vmov 1966171168   ;;  %v442_v38 = vlaneseq  ;;  %p2199_p13 = scmp.ne.s32.totalorder %s2777_s18, 3 }
  0x95   : > { %v306_v2 = vld [vmem:[%s3034_s14 + $0x20] sm:$0xff]  ;;  %v307_v5 = vld [vmem:[%s3034_s14 + $0x28] sm:$0xff]  ;;  %v440_v37 = vunpack.c.l.s4 %v2796_v36  ;;  %v3083_v60 = vld.sshfl [vmem:[%s3027_s29] sm:$0x11 pattern:$0x75316420] }
  0x96   : > { %v2072_v4 = vcombine.high %v302_v1, %v306_v2  ;;  %v2071_v6 = vcombine.low %v302_v1, %v306_v2  ;;  %v310_v7 = vld [vmem:[%s3034_s14 + $0x40] sm:$0xff]  ;;  %v2074_v9 = vcombine.high %v303_v3, %v307_v5  ;;  %v2073_v10 = vcombine.low %v303_v3, %v307_v5  ;;  %v311_v12 = vld [vmem:[%s3034_s14 + $0x48] sm:$0xff] }
  0x97   : > { %v314_v8 = vld [vmem:[%s3034_s14 + $0x60] sm:$0xff]  ;;  %v315_v13 = vld [vmem:[%s3034_s14 + $0x68] sm:$0xff]  ;;  %v441_v47 = vunpack.c.0.s8 %v440_v37  ;;  %v3073_v48 = vshrl.u32 %v442_v38, 7  ;;  %v438_v0 = vcombine.high %v3083_v60, %v3083_v60  ;;  %vm1429_vm0 = vcmask (!%p2199_p13), 1041408  }
  0x98   : > { %v2080_v11 = vcombine.high %v310_v7, %v314_v8  ;;  %v318_v14 = vld [vmem:[%s3034_s14 + $0x80] sm:$0xff]  ;;  %1095 = vmatprep.subr.bf16.mxu0 %v2072_v4  ;;  %v2082_v15 = vcombine.high %v311_v12, %v315_v13  ;;  %v319_v17 = vld [vmem:[%s3034_s14 + $0x88] sm:$0xff]  ;;  %1136 = vmatprep.subr.bf16.mxu1 %v2074_v9  ;;  %v2079_v19 = vcombine.low %v310_v7, %v314_v8 }
  0x99   : > { %v322_v16 = vld [vmem:[%s3034_s14 + $0xa0] sm:$0xff]  ;;  %v323_v18 = vld [vmem:[%s3034_s14 + $0xa8] sm:$0xff]  ;;  %1096 = vmatpush1.bf16.msra.mxu0 %v2071_v6  ;;  %1137 = vmatpush1.bf16.msra.mxu1 %v2073_v10  ;;  %v2081_v20 = vcombine.low %v311_v12, %v315_v13  ;;  %v3080_v57 = vsub.s32 %v441_v47, %v3073_v48 }
  0x9a   : > { %1097 = vmatprep.subr.bf16.mxu0 %v2080_v11  ;;  %v2088_v21 = vcombine.high %v318_v14, %v322_v16  ;;  %1138 = vmatprep.subr.bf16.mxu1 %v2082_v15  ;;  %v2090_v22 = vcombine.high %v319_v17, %v323_v18  ;;  %v326_v23 = vld [vmem:[%s3034_s14 + $0xc0] sm:$0xff]  ;;  %v327_v25 = vld [vmem:[%s3034_s14 + $0xc8] sm:$0xff]  ;;  %v2087_v27 = vcombine.low %v318_v14, %v322_v16 }
  0x9b   : > { %v330_v24 = vld [vmem:[%s3034_s14 + $0xe0] sm:$0xff]  ;;  %v331_v26 = vld [vmem:[%s3034_s14 + $0xe8] sm:$0xff]  ;;  %v2089_v28 = vcombine.low %v319_v17, %v323_v18  ;;  %v3092_v4 = vrot.slane %v438_v0, %v3080_v57 }
  0x9c   : > { %v2096_v29 = vcombine.high %v326_v23, %v330_v24  ;;  %v2098_v30 = vcombine.high %v327_v25, %v331_v26  ;;  %v334_v31 = vld [vmem:[%s3034_s14 + $0x100] sm:$0xff]  ;;  %v335_v33 = vld [vmem:[%s3034_s14 + $0x108] sm:$0xff]  ;;  %v2095_v35 = vcombine.low %v326_v23, %v330_v24  ;;  %v2097_v39 = vcombine.low %v327_v25, %v331_v26 }
  0x9d   : > { %1098 = vmatpush1.bf16.msra.mxu0 %v2079_v19  ;;  %1139 = vmatpush1.bf16.msra.mxu1 %v2081_v20  ;;  %v338_v32 = vld [vmem:[%s3034_s14 + $0x120] sm:$0xff]  ;;  %v339_v34 = vld [vmem:[%s3034_s14 + $0x128] sm:$0xff] }
  0x9e   : > { %1099 = vmatprep.subr.bf16.mxu0 %v2088_v21  ;;  %1140 = vmatprep.subr.bf16.mxu1 %v2090_v22  ;;  %v2104_v40 = vcombine.high %v334_v31, %v338_v32  ;;  %v2106_v41 = vcombine.high %v335_v33, %v339_v34  ;;  %v342_v42 = vld [vmem:[%s3034_s14 + $0x140] sm:$0xff]  ;;  %v343_v44 = vld [vmem:[%s3034_s14 + $0x148] sm:$0xff]  ;;  %v2103_v46 = vcombine.low %v334_v31, %v338_v32 }
  0x9f   : > { %v346_v43 = vld [vmem:[%s3034_s14 + $0x160] sm:$0xff]  ;;  %v347_v45 = vld [vmem:[%s3034_s14 + $0x168] sm:$0xff]  ;;  %v2105_v49 = vcombine.low %v335_v33, %v339_v34  ;;  %1127 = vmatprep.mubr.bf16.mxu0 %v3092_v4  ;;  %1168 = vmatprep.mubr.bf16.mxu1 %v3092_v4 }
  0xa0   : > { %v2112_v50 = vcombine.high %v342_v42, %v346_v43  ;;  %v2114_v51 = vcombine.high %v343_v44, %v347_v45  ;;  %v350_v52 = vld [vmem:[%s3034_s14 + $0x180] sm:$0xff]  ;;  %v351_v54 = vld [vmem:[%s3034_s14 + $0x188] sm:$0xff]  ;;  %v2111_v56 = vcombine.low %v342_v42, %v346_v43  ;;  %v2113_v58 = vcombine.low %v343_v44, %v347_v45 }
  0xa1   : > { %1100 = vmatpush1.bf16.msra.mxu0 %v2087_v27  ;;  %1141 = vmatpush1.bf16.msra.mxu1 %v2089_v28  ;;  %v354_v53 = vld [vmem:[%s3034_s14 + $0x1a0] sm:$0xff]  ;;  %v355_v55 = vld [vmem:[%s3034_s14 + $0x1a8] sm:$0xff] }
  0xa2   : > { %1101 = vmatprep.subr.bf16.mxu0 %v2096_v29  ;;  %1142 = vmatprep.subr.bf16.mxu1 %v2098_v30  ;;  %v2120_v59 = vcombine.high %v350_v52, %v354_v53  ;;  %v2122_v61 = vcombine.high %v351_v54, %v355_v55  ;;  %v358_v62 = vld [vmem:[%s3034_s14 + $0x1c0] sm:$0xff]  ;;  %v359_v1 = vld [vmem:[%s3034_s14 + $0x1c8] sm:$0xff]  ;;  %v2119_v3 = vcombine.low %v350_v52, %v354_v53 }
  0xa3   : > { %v362_v63 = vld [vmem:[%s3034_s14 + $0x1e0] sm:$0xff]  ;;  %v363_v2 = vld [vmem:[%s3034_s14 + $0x1e8] sm:$0xff]  ;;  %v2121_v5 = vcombine.low %v351_v54, %v355_v55 }
  0xa4   : > { %v2128_v6 = vcombine.high %v358_v62, %v362_v63  ;;  %v2130_v7 = vcombine.high %v359_v1, %v363_v2  ;;  %v366_v8 = vld [vmem:[%s3034_s14 + $0x200] sm:$0xff]  ;;  %v367_v10 = vld [vmem:[%s3034_s14 + $0x208] sm:$0xff]  ;;  %v2127_v12 = vcombine.low %v358_v62, %v362_v63  ;;  %v2129_v13 = vcombine.low %v359_v1, %v363_v2 }
  0xa5   : > { %1102 = vmatpush1.bf16.msra.mxu0 %v2095_v35  ;;  %1143 = vmatpush1.bf16.msra.mxu1 %v2097_v39  ;;  %v370_v9 = vld [vmem:[%s3034_s14 + $0x220] sm:$0xff]  ;;  %v371_v11 = vld [vmem:[%s3034_s14 + $0x228] sm:$0xff] }
  0xa6   : > { %1103 = vmatprep.subr.bf16.mxu0 %v2104_v40  ;;  %1144 = vmatprep.subr.bf16.mxu1 %v2106_v41  ;;  %v2136_v14 = vcombine.high %v366_v8, %v370_v9  ;;  %v2138_v15 = vcombine.high %v367_v10, %v371_v11  ;;  %v374_v16 = vld [vmem:[%s3034_s14 + $0x240] sm:$0xff]  ;;  %v375_v18 = vld [vmem:[%s3034_s14 + $0x248] sm:$0xff]  ;;  %v2135_v20 = vcombine.low %v366_v8, %v370_v9 }
  0xa7   : > { %v378_v17 = vld [vmem:[%s3034_s14 + $0x260] sm:$0xff]  ;;  %v379_v19 = vld [vmem:[%s3034_s14 + $0x268] sm:$0xff]  ;;  %v2137_v21 = vcombine.low %v367_v10, %v371_v11 }
  0xa8   : > { %v2144_v22 = vcombine.high %v374_v16, %v378_v17  ;;  %v2146_v23 = vcombine.high %v375_v18, %v379_v19  ;;  %v382_v24 = vld [vmem:[%s3034_s14 + $0x280] sm:$0xff]  ;;  %v383_v26 = vld [vmem:[%s3034_s14 + $0x288] sm:$0xff]  ;;  %v2143_v28 = vcombine.low %v374_v16, %v378_v17  ;;  %v2145_v29 = vcombine.low %v375_v18, %v379_v19 }
  0xa9   : > { %1104 = vmatpush1.bf16.msra.mxu0 %v2103_v46  ;;  %1145 = vmatpush1.bf16.msra.mxu1 %v2105_v49  ;;  %v386_v25 = vld [vmem:[%s3034_s14 + $0x2a0] sm:$0xff]  ;;  %v387_v27 = vld [vmem:[%s3034_s14 + $0x2a8] sm:$0xff] }
  0xaa   : > { %1105 = vmatprep.subr.bf16.mxu0 %v2112_v50  ;;  %1146 = vmatprep.subr.bf16.mxu1 %v2114_v51  ;;  %v2152_v30 = vcombine.high %v382_v24, %v386_v25  ;;  %v2154_v31 = vcombine.high %v383_v26, %v387_v27  ;;  %v390_v32 = vld [vmem:[%s3034_s14 + $0x2c0] sm:$0xff]  ;;  %v391_v34 = vld [vmem:[%s3034_s14 + $0x2c8] sm:$0xff]  ;;  %v2151_v36 = vcombine.low %v382_v24, %v386_v25  ;;  %v317_v24 = vld [vmem:[%s3034_s14 + $0x78] sm:$0xff] }
  0xab   : > { %v394_v33 = vld [vmem:[%s3034_s14 + $0x2e0] sm:$0xff]  ;;  %v395_v35 = vld [vmem:[%s3034_s14 + $0x2e8] sm:$0xff]  ;;  %v2153_v37 = vcombine.low %v383_v26, %v387_v27 }
  0xac   : > { %v2160_v38 = vcombine.high %v390_v32, %v394_v33  ;;  %v2162_v39 = vcombine.high %v391_v34, %v395_v35  ;;  %v398_v40 = vld [vmem:[%s3034_s14 + $0x300] sm:$0xff]  ;;  %v399_v42 = vld [vmem:[%s3034_s14 + $0x308] sm:$0xff]  ;;  %v2159_v44 = vcombine.low %v390_v32, %v394_v33  ;;  %v2161_v45 = vcombine.low %v391_v34, %v395_v35  ;;  %v328_v35 = vld [vmem:[%s3034_s14 + $0xd0] sm:$0xff] }
  0xad   : > { %1106 = vmatpush1.bf16.msra.mxu0 %v2111_v56  ;;  %1147 = vmatpush1.bf16.msra.mxu1 %v2113_v58  ;;  %v402_v41 = vld [vmem:[%s3034_s14 + $0x320] sm:$0xff]  ;;  %v403_v43 = vld [vmem:[%s3034_s14 + $0x328] sm:$0xff] }
  0xae   : > { %1107 = vmatprep.subr.bf16.mxu0 %v2120_v59  ;;  %1148 = vmatprep.subr.bf16.mxu1 %v2122_v61  ;;  %v2168_v46 = vcombine.high %v398_v40, %v402_v41  ;;  %v2170_v47 = vcombine.high %v399_v42, %v403_v43  ;;  %v406_v49 = vld [vmem:[%s3034_s14 + $0x340] sm:$0xff]  ;;  %v407_v51 = vld [vmem:[%s3034_s14 + $0x348] sm:$0xff]  ;;  %v2167_v53 = vcombine.low %v398_v40, %v402_v41 }
  0xaf   : > { %v410_v50 = vld [vmem:[%s3034_s14 + $0x360] sm:$0xff]  ;;  %v411_v52 = vld [vmem:[%s3034_s14 + $0x368] sm:$0xff]  ;;  %v2169_v54 = vcombine.low %v399_v42, %v403_v43  ;;  %v336_v43 = vld [vmem:[%s3034_s14 + $0x110] sm:$0xff] }
  0xb0   : > { %v2176_v55 = vcombine.high %v406_v49, %v410_v50  ;;  %v2178_v56 = vcombine.high %v407_v51, %v411_v52  ;;  %v414_v58 = vld [vmem:[%s3034_s14 + $0x380] sm:$0xff]  ;;  %v415_v61 = vld [vmem:[%s3034_s14 + $0x388] sm:$0xff]  ;;  %v2175_v63 = vcombine.low %v406_v49, %v410_v50  ;;  %v2177_v0 = vcombine.low %v407_v51, %v411_v52  ;;  %v344_v51 = vld [vmem:[%s3034_s14 + $0x150] sm:$0xff] }
  0xb1   : > { %1108 = vmatpush1.bf16.msra.mxu0 %v2119_v3  ;;  %1149 = vmatpush1.bf16.msra.mxu1 %v2121_v5  ;;  %v418_v59 = vld [vmem:[%s3034_s14 + $0x3a0] sm:$0xff]  ;;  %v419_v62 = vld [vmem:[%s3034_s14 + $0x3a8] sm:$0xff]  ;;  %v348_v52 = vld [vmem:[%s3034_s14 + $0x170] sm:$0xff] }
  0xb2   : > { %1109 = vmatprep.subr.bf16.mxu0 %v2128_v6  ;;  %1150 = vmatprep.subr.bf16.mxu1 %v2130_v7  ;;  %v2184_v1 = vcombine.high %v414_v58, %v418_v59  ;;  %v2186_v2 = vcombine.high %v415_v61, %v419_v62  ;;  %v422_v3 = vld [vmem:[%s3034_s14 + $0x3c0] sm:$0xff]  ;;  %v423_v6 = vld [vmem:[%s3034_s14 + $0x3c8] sm:$0xff]  ;;  %v2183_v8 = vcombine.low %v414_v58, %v418_v59 }
  0xb3   : > { %v426_v5 = vld [vmem:[%s3034_s14 + $0x3e0] sm:$0xff]  ;;  %v427_v7 = vld [vmem:[%s3034_s14 + $0x3e8] sm:$0xff]  ;;  %v2185_v9 = vcombine.low %v415_v61, %v419_v62  ;;  %v2116_v58 = vcombine.high %v344_v51, %v348_v52  ;;  %v352_v61 = vld [vmem:[%s3034_s14 + $0x190] sm:$0xff] }
  0xb4   : > { %v2192_v10 = vcombine.high %v422_v3, %v426_v5  ;;  %v2194_v11 = vcombine.high %v423_v6, %v427_v7  ;;  %v2191_v16 = vcombine.low %v422_v3, %v426_v5  ;;  %v2193_v17 = vcombine.low %v423_v6, %v427_v7  ;;  %v356_v62 = vld [vmem:[%s3034_s14 + $0x1b0] sm:$0xff] }
  0xb5   : > { %1110 = vmatpush1.bf16.msra.mxu0 %v2127_v12  ;;  %1151 = vmatpush1.bf16.msra.mxu1 %v2129_v13  ;;  %v304_v12 = vld [vmem:[%s3034_s14 + $0x10] sm:$0xff]  ;;  %v2124_v3 = vcombine.high %v352_v61, %v356_v62 }
  0xb6   : > { %1111 = vmatprep.subr.bf16.mxu0 %v2136_v14  ;;  %1152 = vmatprep.subr.bf16.mxu1 %v2138_v15  ;;  %v308_v13 = vld [vmem:[%s3034_s14 + $0x30] sm:$0xff]  ;;  %v305_v14 = vld [vmem:[%s3034_s14 + $0x18] sm:$0xff] }
  0xb7   : > { %v309_v15 = vld [vmem:[%s3034_s14 + $0x38] sm:$0xff]  ;;  %v2076_v18 = vcombine.high %v304_v12, %v308_v13  ;;  %v2075_v25 = vcombine.low %v304_v12, %v308_v13  ;;  %v360_v6 = vld [vmem:[%s3034_s14 + $0x1d0] sm:$0xff] }
  0xb8   : > { %v2078_v19 = vcombine.high %v305_v14, %v309_v15  ;;  %v2077_v26 = vcombine.low %v305_v14, %v309_v15  ;;  %v364_v7 = vld [vmem:[%s3034_s14 + $0x1f0] sm:$0xff] }
  0xb9   : > { %1112 = vmatpush1.bf16.msra.mxu0 %v2135_v20  ;;  %1153 = vmatpush1.bf16.msra.mxu1 %v2137_v21  ;;  %v312_v20 = vld [vmem:[%s3034_s14 + $0x50] sm:$0xff]  ;;  %v2132_v12 = vcombine.high %v360_v6, %v364_v7 }
  0xba   : > { %1113 = vmatprep.subr.bf16.mxu0 %v2144_v22  ;;  %1154 = vmatprep.subr.bf16.mxu1 %v2146_v23  ;;  %v316_v21 = vld [vmem:[%s3034_s14 + $0x70] sm:$0xff]  ;;  %v3136_v22 = vrot.slane %v3083_v60, %v3080_v57  ;;  %v313_v23 = vld [vmem:[%s3034_s14 + $0x58] sm:$0xff] }
  0xbb   : > { %v2084_v27 = vcombine.high %v312_v20, %v316_v21  ;;  %v321_v57 = vld [vmem:[%s3034_s14 + $0x98] sm:$0xff]  ;;  %v2085_v32 = vcombine.low %v313_v23, %v317_v24  ;;  %v368_v14 = vld [vmem:[%s3034_s14 + $0x210] sm:$0xff] }
  0xbc   : > { %v325_v60 = vld [vmem:[%s3034_s14 + $0xb8] sm:$0xff]  ;;  %v372_v15 = vld [vmem:[%s3034_s14 + $0x230] sm:$0xff] }
  0xbd   : > { %1114 = vmatpush1.bf16.msra.mxu0 %v2143_v28  ;;  %1155 = vmatpush1.bf16.msra.mxu1 %v2145_v29  ;;  %v2086_v28 = vcombine.high %v313_v23, %v317_v24  ;;  %v320_v29 = vld [vmem:[%s3034_s14 + $0x90] sm:$0xff]  ;;  %v2094_v34 = vcombine.high %v321_v57, %v325_v60  ;;  %v2093_v40 = vcombine.low %v321_v57, %v325_v60 }
  0xbe   : > { %1115 = vmatprep.subr.bf16.mxu0 %v2152_v30  ;;  %1156 = vmatprep.subr.bf16.mxu1 %v2154_v31  ;;  %v324_v30 = vld [vmem:[%s3034_s14 + $0xb0] sm:$0xff]  ;;  %v2083_v31 = vcombine.low %v312_v20, %v316_v21  ;;  %v2140_v20 = vcombine.high %v368_v14, %v372_v15 }
  0xbf   : > { %v2092_v33 = vcombine.high %v320_v29, %v324_v30  ;;  %v376_v23 = vld [vmem:[%s3034_s14 + $0x250] sm:$0xff] }
  0xc0   : > { %v380_v24 = vld [vmem:[%s3034_s14 + $0x270] sm:$0xff] }
  0xc1   : > { %1116 = vmatpush1.bf16.msra.mxu0 %v2151_v36  ;;  %1157 = vmatpush1.bf16.msra.mxu1 %v2153_v37  ;;  %v332_v36 = vld [vmem:[%s3034_s14 + $0xf0] sm:$0xff]  ;;  %v329_v37 = vld [vmem:[%s3034_s14 + $0xd8] sm:$0xff] }
  0xc2   : > { %1117 = vmatprep.subr.bf16.mxu0 %v2160_v38  ;;  %1158 = vmatprep.subr.bf16.mxu1 %v2162_v39  ;;  %v333_v38 = vld [vmem:[%s3034_s14 + $0xf8] sm:$0xff]  ;;  %v2091_v39 = vcombine.low %v320_v29, %v324_v30  ;;  %v2100_v41 = vcombine.high %v328_v35, %v332_v36  ;;  %v2148_v29 = vcombine.high %v376_v23, %v380_v24  ;;  %v384_v57 = vld [vmem:[%s3034_s14 + $0x290] sm:$0xff] }
  0xc3   : > { %v2102_v42 = vcombine.high %v329_v37, %v333_v38  ;;  %v388_v60 = vld [vmem:[%s3034_s14 + $0x2b0] sm:$0xff] }
  0xc5   : > { %1118 = vmatpush1.bf16.msra.mxu0 %v2159_v44  ;;  %1159 = vmatpush1.bf16.msra.mxu1 %v2161_v45  ;;  %v340_v44 = vld [vmem:[%s3034_s14 + $0x130] sm:$0xff]  ;;  %v337_v45 = vld [vmem:[%s3034_s14 + $0x118] sm:$0xff] }
  0xc6   : > { %1119 = vmatprep.subr.bf16.mxu0 %v2168_v46  ;;  %1160 = vmatprep.subr.bf16.mxu1 %v2170_v47  ;;  %v341_v46 = vld [vmem:[%s3034_s14 + $0x138] sm:$0xff]  ;;  %v2099_v47 = vcombine.low %v328_v35, %v332_v36  ;;  %v2108_v49 = vcombine.high %v336_v43, %v340_v44  ;;  %v2156_v35 = vcombine.high %v384_v57, %v388_v60 }
  0xc7   : > { %v2110_v50 = vcombine.high %v337_v45, %v341_v46 }
  0xc9   : > { %1120 = vmatpush1.bf16.msra.mxu0 %v2167_v53  ;;  %1161 = vmatpush1.bf16.msra.mxu1 %v2169_v54  ;;  %v345_v53 = vld [vmem:[%s3034_s14 + $0x158] sm:$0xff] }
  0xca   : > { %1121 = vmatprep.subr.bf16.mxu0 %v2176_v55  ;;  %1162 = vmatprep.subr.bf16.mxu1 %v2178_v56  ;;  %v349_v54 = vld [vmem:[%s3034_s14 + $0x178] sm:$0xff]  ;;  %v2107_v55 = vcombine.low %v336_v43, %v340_v44  ;;  %v2109_v56 = vcombine.low %v337_v45, %v341_v46  ;;  %v400_v45 = vld [vmem:[%s3034_s14 + $0x310] sm:$0xff] }
  0xcb   : > { %v2118_v59 = vcombine.high %v345_v53, %v349_v54  ;;  %v404_v46 = vld [vmem:[%s3034_s14 + $0x330] sm:$0xff] }
  0xcd   : > { %1122 = vmatpush1.bf16.msra.mxu0 %v2175_v63  ;;  %1163 = vmatpush1.bf16.msra.mxu1 %v2177_v0  ;;  %v353_v63 = vld [vmem:[%s3034_s14 + $0x198] sm:$0xff] }
  0xce   : > { %1123 = vmatprep.subr.bf16.mxu0 %v2184_v1  ;;  %1164 = vmatprep.subr.bf16.mxu1 %v2186_v2  ;;  %v357_v0 = vld [vmem:[%s3034_s14 + $0x1b8] sm:$0xff]  ;;  %v2115_v1 = vcombine.low %v344_v51, %v348_v52  ;;  %v2117_v2 = vcombine.low %v345_v53, %v349_v54  ;;  %v2172_v51 = vcombine.high %v400_v45, %v404_v46  ;;  %v408_v53 = vld [vmem:[%s3034_s14 + $0x350] sm:$0xff] }
  0xcf   : > { %v2126_v5 = vcombine.high %v353_v63, %v357_v0  ;;  %v412_v54 = vld [vmem:[%s3034_s14 + $0x370] sm:$0xff] }
  0xd1   : > { %1124 = vmatpush1.bf16.msra.mxu0 %v2183_v8  ;;  %1165 = vmatpush1.bf16.msra.mxu1 %v2185_v9  ;;  %v361_v8 = vld [vmem:[%s3034_s14 + $0x1d8] sm:$0xff] }
  0xd2   : > { %1125 = vmatprep.subr.bf16.mxu0 %v2192_v10  ;;  %1166 = vmatprep.subr.bf16.mxu1 %v2194_v11  ;;  %v365_v9 = vld [vmem:[%s3034_s14 + $0x1f8] sm:$0xff]  ;;  %v2123_v10 = vcombine.low %v352_v61, %v356_v62  ;;  %v2125_v11 = vcombine.low %v353_v63, %v357_v0  ;;  %v2180_v61 = vcombine.high %v408_v53, %v412_v54  ;;  %v416_v63 = vld [vmem:[%s3034_s14 + $0x390] sm:$0xff] }
  0xd3   : > { %v2134_v13 = vcombine.high %v361_v8, %v365_v9  ;;  %v420_v0 = vld [vmem:[%s3034_s14 + $0x3b0] sm:$0xff] }
  0xd5   : > { %1126 = vmatpush1.bf16.msra.mxu0 %v2191_v16  ;;  %1167 = vmatpush1.bf16.msra.mxu1 %v2193_v17  ;;  %v369_v16 = vld [vmem:[%s3034_s14 + $0x218] sm:$0xff] }
  0xd6   : > { %1177 = vmatprep.subr.bf16.mxu0 %v2076_v18  ;;  %1218 = vmatprep.subr.bf16.mxu1 %v2078_v19  ;;  %v373_v17 = vld [vmem:[%s3034_s14 + $0x238] sm:$0xff]  ;;  %v2131_v18 = vcombine.low %v360_v6, %v364_v7  ;;  %v2133_v19 = vcombine.low %v361_v8, %v365_v9  ;;  %v2188_v6 = vcombine.high %v416_v63, %v420_v0  ;;  %v424_v8 = vld [vmem:[%s3034_s14 + $0x3d0] sm:$0xff] }
  0xd7   : > { %v2142_v21 = vcombine.high %v369_v16, %v373_v17  ;;  %v428_v9 = vld [vmem:[%s3034_s14 + $0x3f0] sm:$0xff] }
  0xd8   : > { %1128 = vmatmul.mubr.bf16.vlgmr.msra.gmra.mrb[0].mxu0 %v3136_v22  ;;  %1169 = vmatmul.mubr.bf16.vlgmr.msra.gmra.mrb[0].mxu1 %v3136_v22 }
  0xd9   : > { %1178 = vmatpush1.bf16.msra.mxu0 %v2075_v25  ;;  %1219 = vmatpush1.bf16.msra.mxu1 %v2077_v26  ;;  %v377_v25 = vld [vmem:[%s3034_s14 + $0x258] sm:$0xff] }
  0xda   : > { %1179 = vmatprep.subr.bf16.mxu0 %v2084_v27  ;;  %1220 = vmatprep.subr.bf16.mxu1 %v2086_v28  ;;  %v381_v26 = vld [vmem:[%s3034_s14 + $0x278] sm:$0xff]  ;;  %v2139_v27 = vcombine.low %v368_v14, %v372_v15  ;;  %v2141_v28 = vcombine.low %v369_v16, %v373_v17  ;;  %v2196_v14 = vcombine.high %v424_v8, %v428_v9 }
  0xdb   : > { %1209 = vmatprep.mubr.bf16.mxu0 %v3092_v4  ;;  %1250 = vmatprep.mubr.bf16.mxu1 %v3092_v4  ;;  %v2101_v4 = vcombine.low %v329_v37, %v333_v38  ;;  %v2150_v30 = vcombine.high %v377_v25, %v381_v26  ;;  %v392_v37 = vld [vmem:[%s3034_s14 + $0x2d0] sm:$0xff]  ;;  %v2195_v16 = vcombine.low %v424_v8, %v428_v9 }
  0xdc   : > { %v396_v38 = vld [vmem:[%s3034_s14 + $0x2f0] sm:$0xff] }
  0xdd   : > { %1180 = vmatpush1.bf16.msra.mxu0 %v2083_v31  ;;  %1221 = vmatpush1.bf16.msra.mxu1 %v2085_v32  ;;  %v385_v31 = vld [vmem:[%s3034_s14 + $0x298] sm:$0xff]  ;;  %v2164_v43 = vcombine.high %v392_v37, %v396_v38 }
  0xde   : > { %1181 = vmatprep.subr.bf16.mxu0 %v2092_v33  ;;  %1222 = vmatprep.subr.bf16.mxu1 %v2094_v34  ;;  %v389_v32 = vld [vmem:[%s3034_s14 + $0x2b8] sm:$0xff]  ;;  %v2147_v33 = vcombine.low %v376_v23, %v380_v24  ;;  %v2149_v34 = vcombine.low %v377_v25, %v381_v26 }
  0xdf   : > { %v2158_v36 = vcombine.high %v385_v31, %v389_v32 }
  0xe1   : > { %1182 = vmatpush1.bf16.msra.mxu0 %v2091_v39  ;;  %1223 = vmatpush1.bf16.msra.mxu1 %v2093_v40  ;;  %v393_v39 = vld [vmem:[%s3034_s14 + $0x2d8] sm:$0xff] }
  0xe2   : > { %1183 = vmatprep.subr.bf16.mxu0 %v2100_v41  ;;  %1224 = vmatprep.subr.bf16.mxu1 %v2102_v42  ;;  %v397_v40 = vld [vmem:[%s3034_s14 + $0x2f8] sm:$0xff]  ;;  %v2155_v41 = vcombine.low %v384_v57, %v388_v60  ;;  %v2157_v42 = vcombine.low %v385_v31, %v389_v32  ;;  %v299_v32 = vld [vmem:[#allocation2] sm:$0xff] }
  0xe3   : > { %v2166_v44 = vcombine.high %v393_v39, %v397_v40 }
  0xe5   : > { %1184 = vmatpush1.bf16.msra.mxu0 %v2099_v47  ;;  %1225 = vmatpush1.bf16.msra.mxu1 %v2101_v4  ;;  %v401_v47 = vld [vmem:[%s3034_s14 + $0x318] sm:$0xff] }
  0xe6   : > { %1185 = vmatprep.subr.bf16.mxu0 %v2108_v49  ;;  %1226 = vmatprep.subr.bf16.mxu1 %v2110_v50  ;;  %v405_v4 = vld [vmem:[%s3034_s14 + $0x338] sm:$0xff]  ;;  %v2163_v49 = vcombine.low %v392_v37, %v396_v38  ;;  %v2165_v50 = vcombine.low %v393_v39, %v397_v40 }
  0xe7   : > { %v2174_v52 = vcombine.high %v401_v47, %v405_v4 }
  0xe9   : > { %1186 = vmatpush1.bf16.msra.mxu0 %v2107_v55  ;;  %1227 = vmatpush1.bf16.msra.mxu1 %v2109_v56  ;;  %v409_v55 = vld [vmem:[%s3034_s14 + $0x358] sm:$0xff] }
  0xea   : > { %1187 = vmatprep.subr.bf16.mxu0 %v2116_v58  ;;  %1228 = vmatprep.subr.bf16.mxu1 %v2118_v59  ;;  %v413_v56 = vld [vmem:[%s3034_s14 + $0x378] sm:$0xff]  ;;  %v2171_v58 = vcombine.low %v400_v45, %v404_v46  ;;  %v2173_v59 = vcombine.low %v401_v47, %v405_v4 }
  0xeb   : > { %v2182_v62 = vcombine.high %v409_v55, %v413_v56  ;;  %v300_v47 = vld [vmem:[#allocation2 + $0x8] sm:$0xff] }
  0xed   : > { %1188 = vmatpush1.bf16.msra.mxu0 %v2115_v1  ;;  %1229 = vmatpush1.bf16.msra.mxu1 %v2117_v2  ;;  %v417_v1 = vld [vmem:[%s3034_s14 + $0x398] sm:$0xff] }
  0xee   : > { %1189 = vmatprep.subr.bf16.mxu0 %v2124_v3  ;;  %1230 = vmatprep.subr.bf16.mxu1 %v2126_v5  ;;  %v421_v2 = vld [vmem:[%s3034_s14 + $0x3b8] sm:$0xff]  ;;  %v2179_v3 = vcombine.low %v408_v53, %v412_v54  ;;  %v2181_v5 = vcombine.low %v409_v55, %v413_v56  ;;  %v1325_v53 = vsub.s32 (!%p2199_p13), 2, %v3073_v48  ;;  %v1329_v54 = vsub.s32 (!%p2199_p13), 3, %v3073_v48 }
  0xef   : > { %v2190_v7 = vcombine.high %v417_v1, %v421_v2  ;;  %v1333_v55 = vsub.s32 (!%p2199_p13), 4, %v3073_v48  ;;  %v1337_v56 = vsub.s32 (!%p2199_p13), 5, %v3073_v48 }
  0xf1   : > { %1190 = vmatpush1.bf16.msra.mxu0 %v2123_v10  ;;  %1231 = vmatpush1.bf16.msra.mxu1 %v2125_v11  ;;  %v425_v10 = vld [vmem:[%s3034_s14 + $0x3d8] sm:$0xff] }
  0xf2   : > { %1191 = vmatprep.subr.bf16.mxu0 %v2132_v12  ;;  %1232 = vmatprep.subr.bf16.mxu1 %v2134_v13  ;;  %v429_v11 = vld [vmem:[%s3034_s14 + $0x3f8] sm:$0xff]  ;;  %v2187_v12 = vcombine.low %v416_v63, %v420_v0  ;;  %v2189_v13 = vcombine.low %v417_v1, %v421_v2  ;;  %v1345_v1 = vsub.s32 (!%p2199_p13), 7, %v3073_v48  ;;  %v1527_v2 = vld [vmem:[#allocation9] sm:$0xff] (!%p2199_p13) }
  0xf3   : > { %v2198_v15 = vcombine.high %v425_v10, %v429_v11  ;;  %v2197_v17 = vcombine.low %v425_v10, %v429_v11  ;;  %v1576_v10 = vld [vmem:[#allocation9 + $0x188] sm:$0xff] (!%p2199_p13)  ;;  %v1559_v11 = vld [vmem:[#allocation9 + $0x100] sm:$0xff] (!%p2199_p13) }
  0xf5   : > { %1192 = vmatpush1.bf16.msra.mxu0 %v2131_v18  ;;  %1233 = vmatpush1.bf16.msra.mxu1 %v2133_v19  ;;  %v2797_v18 = vmov 1983009808  }
  0xf6   : > { %1193 = vmatprep.subr.bf16.mxu0 %v2140_v20  ;;  %1234 = vmatprep.subr.bf16.mxu1 %v2142_v21  ;;  %v1270_v19 = vunpack.c.l.s4 %v2797_v18  ;;  %v1529_v18 = vld [vmem:[#allocation9 + $0x10] sm:$0xff] (!%p2199_p13) }
  0xf8   : > { %v1271_v20 = vunpack.c.0.s8 %v1270_v19 }
  0xf9   : > { %1194 = vmatpush1.bf16.msra.mxu0 %v2139_v27  ;;  %1235 = vmatpush1.bf16.msra.mxu1 %v2141_v28 }
  0xfa   : > { %1195 = vmatprep.subr.bf16.mxu0 %v2148_v29  ;;  %1236 = vmatprep.subr.bf16.mxu1 %v2150_v30  ;;  %v3203_v23 = vsub.s32 %v1271_v20, %v3073_v48 }
  0xfd   : > { %1196 = vmatpush1.bf16.msra.mxu0 %v2147_v33  ;;  %1237 = vmatpush1.bf16.msra.mxu1 %v2149_v34 }
  0xfe   : > { %1197 = vmatprep.subr.bf16.mxu0 %v2156_v35  ;;  %1238 = vmatprep.subr.bf16.mxu1 %v2158_v36 }
 0x101   : > { %1198 = vmatpush1.bf16.msra.mxu0 %v2155_v41  ;;  %1239 = vmatpush1.bf16.msra.mxu1 %v2157_v42 }
 0x102   : > { %1199 = vmatprep.subr.bf16.mxu0 %v2164_v43  ;;  %1240 = vmatprep.subr.bf16.mxu1 %v2166_v44 }
 0x105   : > { %1200 = vmatpush1.bf16.msra.mxu0 %v2163_v49  ;;  %1241 = vmatpush1.bf16.msra.mxu1 %v2165_v50  ;;  %v1313_v50 = vld [vmem:[#allocation8] sm:$0xff] (!%p2199_p13) }
 0x106   : > { %1201 = vmatprep.subr.bf16.mxu0 %v2172_v51  ;;  %1242 = vmatprep.subr.bf16.mxu1 %v2174_v52  ;;  %v1317_v51 = vsub.s32 (!%p2199_p13), 0, %v3073_v48  ;;  %v1321_v52 = vsub.s32 (!%p2199_p13), 1, %v3073_v48  ;;  %v1326_v0 = vrot.slane (!%p2199_p13), %v1313_v50, %v1325_v53  ;;  %v1338_v8 = vrot.slane (!%p2199_p13), %v1313_v50, %v1337_v56 }
 0x108   : > { %v1322_v63 = vrot.slane (!%p2199_p13), %v1313_v50, %v1321_v52 }
 0x109   : > { %1202 = vmatpush1.bf16.msra.mxu0 %v2171_v58  ;;  %1243 = vmatpush1.bf16.msra.mxu1 %v2173_v59  ;;  %v1341_v58 = vsub.s32 (!%p2199_p13), 6, %v3073_v48  ;;  %v1543_v59 = vld [vmem:[#allocation9 + $0x80] sm:$0xff] (!%p2199_p13) }
 0x10a   : > { %1203 = vmatprep.subr.bf16.mxu0 %v2180_v61  ;;  %1244 = vmatprep.subr.bf16.mxu1 %v2182_v62  ;;  %v1544_v61 = vld [vmem:[#allocation9 + $0x88] sm:$0xff] (!%p2199_p13)  ;;  %v1318_v62 = vrot.slane (!%p2199_p13), %v1313_v50, %v1317_v51 }
 0x10b   : > { %v1342_v9 = vrot.slane (!%p2199_p13), %v1313_v50, %v1341_v58 }
 0x10d   : > { %1204 = vmatpush1.bf16.msra.mxu0 %v2179_v3  ;;  %1245 = vmatpush1.bf16.msra.mxu1 %v2181_v5  ;;  %v1528_v3 = vld [vmem:[#allocation9 + $0x8] sm:$0xff] (!%p2199_p13)  ;;  %v1575_v5 = vld [vmem:[#allocation9 + $0x180] sm:$0xff] (!%p2199_p13) }
 0x10e   : > { %1205 = vmatprep.subr.bf16.mxu0 %v2188_v6  ;;  %1246 = vmatprep.subr.bf16.mxu1 %v2190_v7  ;;  %v1330_v6 = vrot.slane (!%p2199_p13), %v1313_v50, %v1329_v54  ;;  %v1334_v7 = vrot.slane (!%p2199_p13), %v1313_v50, %v1333_v55 }
 0x110   : > { %v1348_v19 = vcombine.low (!%p2199_p13), %v1326_v0, %v1330_v6  ;;  %v1364_v20 = vcombine.low (!%p2199_p13), %v1334_v7, %v1338_v8 }
 0x111   : > { %1206 = vmatpush1.bf16.msra.mxu0 %v2187_v12  ;;  %1247 = vmatpush1.bf16.msra.mxu1 %v2189_v13  ;;  %v1560_v12 = vld [vmem:[#allocation9 + $0x108] sm:$0xff] (!%p2199_p13)  ;;  %v1346_v13 = vrot.slane (!%p2199_p13), %v1313_v50, %v1345_v1 }
 0x112   : > { %1207 = vmatprep.subr.bf16.mxu0 %v2196_v14  ;;  %1248 = vmatprep.subr.bf16.mxu1 %v2198_v15  ;;  %v1347_v14 = vcombine.low (!%p2199_p13), %v1318_v62, %v1322_v63  ;;  %v2347_v15 = vpack.c.bf16 (!%p2199_p13), %v1544_v61, %v1543_v59 }
 0x115   : > { %1208 = vmatpush1.bf16.msra.mxu0 %v2195_v16  ;;  %1249 = vmatpush1.bf16.msra.mxu1 %v2197_v17  ;;  %v1545_v16 = vld [vmem:[#allocation9 + $0x90] sm:$0xff] (!%p2199_p13)  ;;  %v1546_v17 = vld [vmem:[#allocation9 + $0x98] sm:$0xff] (!%p2199_p13) }
 0x116   : > { %2348 = vmatprep.subr.bf16.mxu0 (!%p2199_p13), %v2347_v15 }
 0x118   : > { %1210 = vmatmul.mubr.bf16.vlgmr.msra.gmra.mrb[4].mxu0 %v3136_v22  ;;  %1251 = vmatmul.mubr.bf16.vlgmr.msra.gmra.mrb[4].mxu1 %v3136_v22 }
 0x1ab   : > { %v1129_v21 = vpop.f32.mrb[0].mxu0  ;;  %v1170_v24 = vpop.f32.mrb[0].mxu1 }
 0x1ac   : > { %v1131_v25 = vpop.f32.mrb[1].mxu0  ;;  %v1172_v27 = vpop.f32.mrb[1].mxu1 }
 0x1ad   : > { %v1267_v26 = vcombine.low %v1129_v21, %v1131_v25  ;;  %v1133_v28 = vpop.f32.mrb[2].mxu0  ;;  %v1268_v29 = vcombine.low %v1170_v24, %v1172_v27  ;;  %v1174_v30 = vpop.f32.mrb[2].mxu1  ;;  %v2349_v21 = vpack.c.bf16 (!%p2199_p13), %v1528_v3, %v1527_v2  ;;  %v2379_v24 = vpack.c.bf16 (!%p2199_p13), %v1576_v10, %v1575_v5  ;;  %v1530_v25 = vld [vmem:[#allocation9 + $0x18] sm:$0xff] (!%p2199_p13) }
 0x1ae   : > { %v1134_v57 = vpop.f32.mrb[3].mxu0  ;;  %v1175_v31 = vpop.f32.mrb[3].mxu1  ;;  %v1578_v27 = vld [vmem:[#allocation9 + $0x198] sm:$0xff] (!%p2199_p13)  ;;  %v1355_v28 = vrot.slane (!%p2199_p13), %v1347_v14, %v3203_v23  ;;  %v2381_v30 = vpack.c.bf16 (!%p2199_p13), %v1560_v12, %v1559_v11 }
 0x1af   : > { %v1275_v60 = vrot.slane %v1267_v26, %v3203_v23  ;;  %v1282_v22 = vrot.slane %v1268_v29, %v3203_v23  ;;  %v1577_v26 = vld [vmem:[#allocation9 + $0x190] sm:$0xff] (!%p2199_p13)  ;;  %v1365_v29 = vcombine.low (!%p2199_p13), %v1342_v9, %v1346_v13  ;;  %v2351_v57 = vpack.c.bf16 (!%p2199_p13), %v1546_v17, %v1545_v16  ;;  %v1562_v31 = vld [vmem:[#allocation9 + $0x118] sm:$0xff] (!%p2199_p13)  ;;  %2350 = vmatpush3.bf16.msra.mxu0 (!%p2199_p13), %v2349_v21  ;;  %v1563_v16 = vld [vmem:[#allocation9 + $0x120] sm:$0xff] (!%p2199_p13) }
 0x1b0   : > { %2380 = vmatprep.subr.bf16.mxu1 (!%p2199_p13), %v2379_v24  ;;  %v1564_v17 = vld [vmem:[#allocation9 + $0x128] sm:$0xff] (!%p2199_p13)  ;;  %v1533_v24 = vld [vmem:[#allocation9 + $0x30] sm:$0xff] (!%p2199_p13) }
 0x1b1   : > { %v1283_v33 = vcombine.low %v1275_v60, %v1282_v22  ;;  %v1561_v60 = vld [vmem:[#allocation9 + $0x110] sm:$0xff] (!%p2199_p13)  ;;  %v1547_v22 = vld [vmem:[#allocation9 + $0xa0] sm:$0xff] (!%p2199_p13)  ;;  %2382 = vmatpush3.bf16.msra.mxu1 (!%p2199_p13), %v2381_v30  ;;  %2352 = vmatprep.subr.bf16.mxu0 (!%p2199_p13), %v2351_v57  ;;  %v1566_v57 = vld [vmem:[#allocation9 + $0x138] sm:$0xff] (!%p2199_p13) }
 0x1b2   : > { %v1565_v30 = vld [vmem:[#allocation9 + $0x130] sm:$0xff] (!%p2199_p13) }
 0x1b3   : > { %v1303_v34 = vadd.f32 %v1283_v33, %v299_v32  ;;  %v1362_v33 = vrot.slane (!%p2199_p13), %v1348_v19, %v3203_v23  ;;  %v1549_v19 = vld [vmem:[#allocation9 + $0xb0] sm:$0xff] (!%p2199_p13) }
 0x1b5   : > { %1305 = vst [vmem:[#allocation2] sm:$0xff] %v1303_v34  ;;  %v1372_v34 = vrot.slane (!%p2199_p13), %v1364_v20, %v3203_v23  ;;  %v1550_v20 = vld [vmem:[#allocation9 + $0xb8] sm:$0xff] (!%p2199_p13) }
 0x1b6   : > { %v2359_v21 = vpack.c.bf16 (!%p2199_p13), %v1550_v20, %v1549_v19  ;;  %v1607_v19 = vld [vmem:[#allocation9 + $0x280] sm:$0xff] (!%p2199_p13)  ;;  %v1608_v20 = vld [vmem:[#allocation9 + $0x288] sm:$0xff] (!%p2199_p13) }
 0x1bc   : > { %v1311_v32 = vld [vmem:[#allocation2] sm:$0xff] (!%p2199_p13) }
 0x1eb   : > { %v1211_v35 = vpop.f32.mrb[4].mxu0  ;;  %v1252_v36 = vpop.f32.mrb[4].mxu1 }
 0x1ec   : > { %v1213_v37 = vpop.f32.mrb[5].mxu0  ;;  %v1254_v39 = vpop.f32.mrb[5].mxu1 }
 0x1ed   : > { %v1284_v38 = vcombine.low %v1211_v35, %v1213_v37  ;;  %v1215_v40 = vpop.f32.mrb[6].mxu0  ;;  %v1285_v41 = vcombine.low %v1252_v36, %v1254_v39  ;;  %v1256_v42 = vpop.f32.mrb[6].mxu1  ;;  %v2353_v35 = vpack.c.bf16 (!%p2199_p13), %v1530_v25, %v1529_v18  ;;  %v1548_v36 = vld [vmem:[#allocation9 + $0xa8] sm:$0xff] (!%p2199_p13)  ;;  %v1531_v37 = vld [vmem:[#allocation9 + $0x20] sm:$0xff] (!%p2199_p13)  ;;  %v2383_v39 = vpack.c.bf16 (!%p2199_p13), %v1578_v27, %v1577_v26  ;;  %v1534_v25 = vld [vmem:[#allocation9 + $0x38] sm:$0xff] (!%p2199_p13) }
 0x1ee   : > { %v1216_v43 = vpop.f32.mrb[7].mxu0  ;;  %v1257_v45 = vpop.f32.mrb[7].mxu1  ;;  %v2385_v40 = vpack.c.bf16 (!%p2199_p13), %v1562_v31, %v1561_v60  ;;  %v1579_v42 = vld [vmem:[#allocation9 + $0x1a0] sm:$0xff] (!%p2199_p13)  ;;  %v2389_v18 = vpack.c.bf16 (!%p2199_p13), %v1564_v17, %v1563_v16  ;;  %v2361_v26 = vpack.c.bf16 (!%p2199_p13), %v1534_v25, %v1533_v24  ;;  %v1581_v27 = vld [vmem:[#allocation9 + $0x1b0] sm:$0xff] (!%p2199_p13)  ;;  %v2393_v60 = vpack.c.bf16 (!%p2199_p13), %v1566_v57, %v1565_v30  ;;  %v1640_v25 = vld [vmem:[#allocation9 + $0x388] sm:$0xff] (!%p2199_p13) }
 0x1ef   : > { %v1292_v44 = vrot.slane %v1284_v38, %v3203_v23  ;;  %v1299_v46 = vrot.slane %v1285_v41, %v3203_v23  ;;  %1310 = sbr.rel (%p2199_p13) target bundleno = 942 (0x3ae), region = 60  ;;  %v1379_v38 = vrot.slane (!%p2199_p13), %v1365_v29, %v3203_v23  ;;  %v1532_v41 = vld [vmem:[#allocation9 + $0x28] sm:$0xff] (!%p2199_p13)  ;;  %v1363_v45 = vcombine.low (!%p2199_p13), %v1355_v28, %v1362_v33  ;;  %2384 = vmatprep.subr.bf16.mxu1 (!%p2199_p13), %v2383_v39  ;;  %v1582_v28 = vld [vmem:[#allocation9 + $0x1b8] sm:$0xff] (!%p2199_p13)  ;;  %v1551_v31 = vld [vmem:[#allocation9 + $0xc0] sm:$0xff] (!%p2199_p13) }
 0x1f0   : > { %v1580_v43 = vld [vmem:[#allocation9 + $0x1a8] sm:$0xff] (!%p2199_p13)  ;;  %2354 = vmatpush3.bf16.msra.mxu0 (!%p2199_p13), %v2353_v35  ;;  %v2357_v50 = vpack.c.bf16 (!%p2199_p13), %v1532_v41, %v1531_v37  ;;  %2386 = vmatpush3.bf16.msra.mxu1 (!%p2199_p13), %v2385_v40  ;;  %v2391_v29 = vpack.c.bf16 (!%p2199_p13), %v1582_v28, %v1581_v27  ;;  %v1535_v33 = vld [vmem:[#allocation9 + $0x40] sm:$0xff] (!%p2199_p13)  ;;  %v2798_v27 = vmov (!%p2199_p13), 269488144  }
 0x1f1   : > { %v1300_v4 = vcombine.low %v1292_v44, %v1299_v46  ;;  %v2355_v46 = vpack.c.bf16 (!%p2199_p13), %v1548_v36, %v1547_v22  ;;  %v1552_v22 = vld [vmem:[#allocation9 + $0xc8] sm:$0xff] (!%p2199_p13)  ;;  %v1583_v36 = vld [vmem:[#allocation9 + $0x1c0] sm:$0xff] (!%p2199_p13)  ;;  %v1449_v28 = vunpack.c.l.s4 (!%p2199_p13), %v2798_v27 }
 0x1f2   : > { %v1584_v37 = vld [vmem:[#allocation9 + $0x1c8] sm:$0xff] (!%p2199_p13)  ;;  %v1567_v39 = vld [vmem:[#allocation9 + $0x140] sm:$0xff] (!%p2199_p13) }
 0x1f3   : > { %v1304_v49 = vadd.f32 %v1300_v4, %v300_v47  ;;  %v2387_v47 = vpack.c.bf16 (!%p2199_p13), %v1580_v43, %v1579_v42  ;;  %v1380_v4 = vcombine.low (!%p2199_p13), %v1372_v34, %v1379_v38  ;;  %2356 = vmatprep.subr.bf16.mxu0 (!%p2199_p13), %v2355_v46  ;;  %v1536_v34 = vld [vmem:[#allocation9 + $0x48] sm:$0xff] (!%p2199_p13)  ;;  %v2395_v38 = vpack.c.bf16 (!%p2199_p13), %v1584_v37, %v1583_v36  ;;  %v1553_v42 = vld [vmem:[#allocation9 + $0xd0] sm:$0xff] (!%p2199_p13)  ;;  %v1554_v43 = vld [vmem:[#allocation9 + $0xd8] sm:$0xff] (!%p2199_p13) }
 0x1f4   : > { %2358 = vmatpush3.bf16.msra.mxu0 (!%p2199_p13), %v2357_v50  ;;  %v2365_v35 = vpack.c.bf16 (!%p2199_p13), %v1536_v34, %v1535_v33  ;;  %v1568_v40 = vld [vmem:[#allocation9 + $0x148] sm:$0xff] (!%p2199_p13)  ;;  %v1538_v46 = vld [vmem:[#allocation9 + $0x58] sm:$0xff] (!%p2199_p13)  ;;  %v1639_v24 = vld [vmem:[#allocation9 + $0x380] sm:$0xff] (!%p2199_p13) }
 0x1f5   : > { %1306 = vst [vmem:[#allocation2 + $0x8] sm:$0xff] %v1304_v49  ;;  %v3222_v49 = vadd.f32 (!%p2199_p13), %v1363_v45, %v1311_v32  ;;  %2388 = vmatprep.subr.bf16.mxu1 (!%p2199_p13), %v2387_v47  ;;  %2360 = vmatprep.subr.bf16.mxu0 (!%p2199_p13), %v2359_v21  ;;  %v2363_v32 = vpack.c.bf16 (!%p2199_p13), %v1552_v22, %v1551_v31  ;;  %v1585_v47 = vld [vmem:[#allocation9 + $0x1d0] sm:$0xff] (!%p2199_p13)  ;;  %v1592_v36 = vld [vmem:[#allocation9 + $0x208] sm:$0xff] (!%p2199_p13) }
 0x1f6   : > { %2390 = vmatpush3.bf16.msra.mxu1 %v2389_v18  ;;  %v2397_v41 = vpack.c.bf16 %v1568_v40, %v1567_v39  ;;  %v2367_v45 = vpack.c.bf16 %v1554_v43, %v1553_v42  ;;  %v2411_v21 = vpack.c.bf16 %v1608_v20, %v1607_v19  ;;  %v1623_v40 = vld [vmem:[#allocation9 + $0x300] sm:$0xff]  ;;  %v1609_v42 = vld [vmem:[#allocation9 + $0x290] sm:$0xff]  ;;  %v1628_v19 = vld [vmem:[#allocation9 + $0x328] sm:$0xff] }
 0x1f7   : > { %v1387_v52 = vcombine.high %v3222_v49, %v3222_v49  ;;  %v1394_v53 = vrot.slane %v3222_v49, %v3203_v23  ;;  %2392 = vmatprep.subr.bf16.mxu1 %v2391_v29  ;;  %v1450_v29 = vunpack.c.0.s8 %v1449_v28  ;;  %v1597_v28 = vld [vmem:[#allocation9 + $0x230] sm:$0xff] }
 0x1f8   : > { %2362 = vmatpush3.bf16.msra.mxu0 %v2361_v26  ;;  %v2443_v26 = vpack.c.bf16 %v1640_v25, %v1639_v24  ;;  %v1645_v24 = vld [vmem:[#allocation9 + $0x3b0] sm:$0xff]  ;;  %v1646_v25 = vld [vmem:[#allocation9 + $0x3b8] sm:$0xff] }
 0x1f9   : > { %v1401_v56 = vrot.slane %v1387_v52, %v3203_v23  ;;  %v1402_v58 = vcombine.high %v1394_v53, %v1394_v53  ;;  %v1430_v59 = vsel %vm1429_vm0, %v1394_v53, -inf  ;;  %2364 = vmatprep.subr.bf16.mxu0 %v2363_v32  ;;  %v1569_v53 = vld [vmem:[#allocation9 + $0x150] sm:$0xff]  ;;  %v1453_v30 = vsub.s32 %v1450_v29, %v3073_v48  ;;  %v1598_v29 = vld [vmem:[#allocation9 + $0x238] sm:$0xff] }
 0x1fa   : > { %2394 = vmatpush3.bf16.msra.mxu1 %v2393_v60 }
 0x1fb   : > { %v1403_v0 = vcombine.high %v1401_v56, %v1401_v56  ;;  %v1431_v1 = vsel %vm1429_vm0, %v1402_v58, -inf  ;;  %v1432_v2 = vsel %vm1429_vm0, %v1401_v56, -inf  ;;  %2396 = vmatprep.subr.bf16.mxu1 %v2395_v38  ;;  %v1556_v58 = vld [vmem:[#allocation9 + $0xe8] sm:$0xff] }
 0x1fc   : > { %v1312_v44 = vld [vmem:[#allocation2 + $0x8] sm:$0xff]  ;;  %2366 = vmatpush3.bf16.msra.mxu0 %v2365_v35  ;;  %v1591_v35 = vld [vmem:[#allocation9 + $0x200] sm:$0xff] }
 0x1fd   : > { %v3224_v51 = vadd.f32 %v1380_v4, %v1312_v44  ;;  %v1433_v8 = vsel %vm1429_vm0, %v1403_v0, -inf  ;;  %v1537_v44 = vld [vmem:[#allocation9 + $0x50] sm:$0xff]  ;;  %v1586_v4 = vld [vmem:[#allocation9 + $0x1d8] sm:$0xff]  ;;  %2368 = vmatprep.subr.bf16.mxu0 %v2367_v45  ;;  %v1587_v0 = vld [vmem:[#allocation9 + $0x1e0] sm:$0xff] }
 0x1fe   : > { %2398 = vmatpush3.bf16.msra.mxu1 %v2397_v41  ;;  %v2369_v50 = vpack.c.bf16 %v1538_v46, %v1537_v44  ;;  %v2399_v52 = vpack.c.bf16 %v1586_v4, %v1585_v47  ;;  %v1624_v41 = vld [vmem:[#allocation9 + $0x308] sm:$0xff]  ;;  %v2413_v44 = vpack.c.bf16 %v1592_v36, %v1591_v35  ;;  %v1641_v46 = vld [vmem:[#allocation9 + $0x390] sm:$0xff]  ;;  %v1642_v47 = vld [vmem:[#allocation9 + $0x398] sm:$0xff]  ;;  %v2425_v35 = vpack.c.bf16 %v1598_v29, %v1597_v28 }
 0x1ff   : > { %v1404_v54 = vcombine.high %v3224_v51, %v3224_v51  ;;  %v1411_v55 = vrot.slane %v3224_v51, %v3203_v23  ;;  %v2445_v4 = vpack.c.bf16 %v1624_v41, %v1623_v40  ;;  %v1599_v41 = vld [vmem:[#allocation9 + $0x240] sm:$0xff] }
 0x200   : > { %2370 = vmatpush3.bf16.msra.mxu0 %v2369_v50  ;;  %2400 = vmatprep.subr.bf16.mxu1 %v2399_v52  ;;  %v1593_v52 = vld [vmem:[#allocation9 + $0x210] sm:$0xff] }
 0x201   : > { %v1418_v61 = vrot.slane %v1404_v54, %v3203_v23  ;;  %v1419_v62 = vcombine.high %v1411_v55, %v1411_v55  ;;  %v1434_v63 = vsel %vm1429_vm0, %v1411_v55, -inf  ;;  %v1570_v54 = vld [vmem:[#allocation9 + $0x158] sm:$0xff]  ;;  %v1555_v55 = vld [vmem:[#allocation9 + $0xe0] sm:$0xff] }
 0x202   : > { %v1435_v3 = vmax.f32 %v1430_v59, %v1434_v63  ;;  %v2401_v56 = vpack.c.bf16 %v1570_v54, %v1569_v53  ;;  %v1539_v59 = vld [vmem:[#allocation9 + $0x60] sm:$0xff]  ;;  %v1594_v53 = vld [vmem:[#allocation9 + $0x218] sm:$0xff] }
 0x203   : > { %v1420_v5 = vcombine.high %v1418_v61, %v1418_v61  ;;  %v1436_v6 = vsel %vm1429_vm0, %v1419_v62, -inf  ;;  %v1438_v7 = vsel %vm1429_vm0, %v1418_v61, -inf  ;;  %v1540_v61 = vld [vmem:[#allocation9 + $0x68] sm:$0xff]  ;;  %v2371_v62 = vpack.c.bf16 %v1556_v58, %v1555_v55 }
 0x204   : > { %v1437_v9 = vmax.f32 %v1431_v1, %v1436_v6  ;;  %v1439_v10 = vmax.f32 %v1432_v2, %v1438_v7  ;;  %v2373_v63 = vpack.c.bf16 %v1540_v61, %v1539_v59  ;;  %v1588_v1 = vld [vmem:[#allocation9 + $0x1e8] sm:$0xff]  ;;  %v1571_v2 = vld [vmem:[#allocation9 + $0x160] sm:$0xff]  ;;  %v1557_v6 = vld [vmem:[#allocation9 + $0xf0] sm:$0xff]  ;;  %2402 = vmatpush3.bf16.msra.mxu1 %v2401_v56 }
 0x205   : > { %v1440_v11 = vsel %vm1429_vm0, %v1420_v5, -inf  ;;  %v1572_v5 = vld [vmem:[#allocation9 + $0x168] sm:$0xff]  ;;  %v1558_v7 = vld [vmem:[#allocation9 + $0xf8] sm:$0xff]  ;;  %2372 = vmatprep.subr.bf16.mxu0 %v2371_v62  ;;  %v1611_v59 = vld [vmem:[#allocation9 + $0x2a0] sm:$0xff] }
 0x206   : > { %v1441_v12 = vmax.f32 %v1433_v8, %v1440_v11  ;;  %v1442_v13 = vmax.f32 %v1435_v3, %v1437_v9  ;;  %v2403_v3 = vpack.c.bf16 %v1588_v1, %v1587_v0  ;;  %v2405_v8 = vpack.c.bf16 %v1572_v5, %v1571_v2  ;;  %v1542_v11 = vld [vmem:[#allocation9 + $0x78] sm:$0xff]  ;;  %2374 = vmatpush3.bf16.msra.mxu0 %v2373_v63  ;;  %v1612_v61 = vld [vmem:[#allocation9 + $0x2a8] sm:$0xff]  ;;  %v1625_v1 = vld [vmem:[#allocation9 + $0x310] sm:$0xff] }
 0x207   : > { %v2375_v9 = vpack.c.bf16 %v1558_v7, %v1557_v6  ;;  %v2447_v0 = vpack.c.bf16 %v1642_v47, %v1641_v46  ;;  %v1643_v5 = vld [vmem:[#allocation9 + $0x3a0] sm:$0xff]  ;;  %v1644_v6 = vld [vmem:[#allocation9 + $0x3a8] sm:$0xff] }
 0x208   : > { %v1443_v14 = vmax.f32 %v1439_v10, %v1441_v12  ;;  %v1541_v10 = vld [vmem:[#allocation9 + $0x70] sm:$0xff]  ;;  %2404 = vmatprep.subr.bf16.mxu1 %v2403_v3  ;;  %v2417_v3 = vpack.c.bf16 %v1594_v53, %v1593_v52  ;;  %v1631_v47 = vld [vmem:[#allocation9 + $0x340] sm:$0xff] }
 0x209   : > { %v1589_v12 = vld [vmem:[#allocation9 + $0x1f0] sm:$0xff]  ;;  %v2377_v16 = vpack.c.bf16 %v1542_v11, %v1541_v10  ;;  %2376 = vmatprep.subr.bf16.mxu0 %v2375_v9  ;;  %2406 = vmatpush3.bf16.msra.mxu1 %v2405_v8  ;;  %v2419_v9 = vpack.c.bf16 %v1612_v61, %v1611_v59  ;;  %v1595_v10 = vld [vmem:[#allocation9 + $0x220] sm:$0xff]  ;;  %v1596_v11 = vld [vmem:[#allocation9 + $0x228] sm:$0xff] }
 0x20a   : > { %v1444_v15 = vmax.f32 %v1442_v13, %v1443_v14  ;;  %v1590_v13 = vld [vmem:[#allocation9 + $0x1f8] sm:$0xff]  ;;  %v1573_v14 = vld [vmem:[#allocation9 + $0x170] sm:$0xff]  ;;  %v1619_v61 = vld [vmem:[#allocation9 + $0x2e0] sm:$0xff] }
 0x20b   : > { %v2407_v17 = vpack.c.bf16 %v1590_v13, %v1589_v12  ;;  %2378 = vmatpush3.bf16.msra.mxu0 %v2377_v16  ;;  %v1649_v53 = vld [vmem:[#allocation9 + $0x3d0] sm:$0xff] }
 0x20c   : > { %1445 = vmax.xlane.f32.xlu0 %v1444_v15  ;;  %v1574_v15 = vld [vmem:[#allocation9 + $0x178] sm:$0xff]  ;;  %2412 = vmatprep.subr.bf16.mxu0 %v2411_v21  ;;  %v2421_v21 = vpack.c.bf16 %v1596_v11, %v1595_v10 }
 0x20d   : > { %v2409_v18 = vpack.c.bf16 %v1574_v15, %v1573_v14  ;;  %2408 = vmatprep.subr.bf16.mxu1 %v2407_v17  ;;  %v1613_v14 = vld [vmem:[#allocation9 + $0x2b0] sm:$0xff]  ;;  %v1614_v15 = vld [vmem:[#allocation9 + $0x2b8] sm:$0xff]  ;;  %v2451_v17 = vpack.c.bf16 %v1644_v6, %v1643_v5  ;;  %v1603_v6 = vld [vmem:[#allocation9 + $0x260] sm:$0xff] }
 0x20e   : > { %v2423_v27 = vpack.c.bf16 %v1614_v15, %v1613_v14  ;;  %v1622_v10 = vld [vmem:[#allocation9 + $0x2f8] sm:$0xff]  ;;  %v1653_v15 = vld [vmem:[#allocation9 + $0x3f0] sm:$0xff] }
 0x20f   : > { %2410 = vmatpush3.bf16.msra.mxu1 %v2409_v18  ;;  %v1627_v18 = vld [vmem:[#allocation9 + $0x320] sm:$0xff] }
 0x210   : > { %2444 = vmatprep.subr.bf16.mxu1 %v2443_v26 }
 0x299   : > { %v1446_v57 = vpop.xlane.xlu0 %1445 }
 0x29a   : > { %v1454_v60 = vrot.slane %v1446_v57, %v1453_v30  ;;  %v2453_v57 = vpack.c.bf16 %v1628_v19, %v1627_v18  ;;  %v1605_v18 = vld [vmem:[#allocation9 + $0x270] sm:$0xff]  ;;  %v1606_v19 = vld [vmem:[#allocation9 + $0x278] sm:$0xff] }
 0x29c   : > { %v1456_v31 = vsub.f32 %v3222_v49, %v1454_v60  ;;  %v1457_v22 = vsub.f32 %v3224_v51, %v1454_v60  ;;  %v1610_v49 = vld [vmem:[#allocation9 + $0x298] sm:$0xff]  ;;  %v1615_v60 = vld [vmem:[#allocation9 + $0x2c0] sm:$0xff] }
 0x29d   : > { %v2415_v58 = vpack.c.bf16 %v1610_v49, %v1609_v42  ;;  %v1600_v42 = vld [vmem:[#allocation9 + $0x248] sm:$0xff] }
 0x29e   : > { %v1458_v32 = vmul.f32 1.442695, %v1456_v31  ;;  %v1460_v33 = vmul.f32 1.442695, %v1457_v22  ;;  %v1616_v31 = vld [vmem:[#allocation9 + $0x2c8] sm:$0xff]  ;;  %v2455_v22 = vpack.c.bf16 %v1646_v25, %v1645_v24  ;;  %v2429_v52 = vpack.c.bf16 %v1600_v42, %v1599_v41  ;;  %v1637_v24 = vld [vmem:[#allocation9 + $0x370] sm:$0xff] }
 0x29f   : > { %v2427_v40 = vpack.c.bf16 %v1616_v31, %v1615_v60  ;;  %v1638_v25 = vld [vmem:[#allocation9 + $0x378] sm:$0xff] }
 0x2a0   : > { %2571 = vpow2.f32 %v1458_v32  ;;  %v1629_v32 = vld [vmem:[#allocation9 + $0x330] sm:$0xff] }
 0x2a1   : > { %2573 = vpow2.f32 %v1460_v33  ;;  %v1630_v33 = vld [vmem:[#allocation9 + $0x338] sm:$0xff] }
 0x2a2   : > { %v2457_v49 = vpack.c.bf16 %v1630_v33, %v1629_v32 }
 0x2aa   : > { %v2572_v34 = vpop.eup %2571 }
 0x2ab   : > { %v2574_v37 = vpop.eup %2573  ;;  %v1471_v38 = vrot.slane %v2572_v34, %v3203_v23  ;;  %v1464_v39 = vcombine.high %v2572_v34, %v2572_v34 }
 0x2ac   : > { %v3249_v48 = vrot.slane %v2574_v37, %v3203_v23  ;;  %v1481_v43 = vcombine.high %v2574_v37, %v2574_v37  ;;  %v1647_v37 = vld [vmem:[#allocation9 + $0x3c0] sm:$0xff] }
 0x2ad   : > { %v1479_v51 = vcombine.high %v1471_v38, %v1471_v38  ;;  %v1478_v45 = vrot.slane %v1464_v39, %v3203_v23  ;;  %v1506_v54 = vsel %vm1429_vm0, %v1471_v38, 0.0 }
 0x2ae   : > { %v3253_v50 = vrot.slane %v1481_v43, %v3203_v23  ;;  %v1496_v63 = vcombine.high %v3249_v48, %v3249_v48  ;;  %v1626_v23 = vld [vmem:[#allocation9 + $0x318] sm:$0xff]  ;;  %v1513_v20 = vsel %vm1429_vm0, %v3249_v48, 0.0 }
 0x2af   : > { %v1507_v55 = vsel %vm1429_vm0, %v1479_v51, 0.0  ;;  %1719 = vmatprep.mubr.f32.mxu0 %v1479_v51  ;;  %v1480_v56 = vcombine.high %v1478_v45, %v1478_v45  ;;  %v1509_v2 = vsel %vm1429_vm0, %v1478_v45, 0.0  ;;  %v2449_v13 = vpack.c.bf16 %v1626_v23, %v1625_v1  ;;  %v1617_v51 = vld [vmem:[#allocation9 + $0x2d0] sm:$0xff]  ;;  %v1634_v1 = vld [vmem:[#allocation9 + $0x358] sm:$0xff] }
 0x2b0   : > { %v1508_v62 = vadd.f32 %v1507_v55, %v1506_v54  ;;  %1720 = vmatmul.mubr.f32.vlgmr.msra.gmra.mrb[0].mxu0 %v1471_v38  ;;  %v1497_v8 = vcombine.high %v3253_v50, %v3253_v50  ;;  %v1515_v30 = vsel %vm1429_vm0, %v1496_v63, 0.0  ;;  %v1517_v36 = vsel %vm1429_vm0, %v3253_v50, 0.0  ;;  %v1648_v38 = vld [vmem:[#allocation9 + $0x3c8] sm:$0xff]  ;;  %v1650_v54 = vld [vmem:[#allocation9 + $0x3d8] sm:$0xff] }
 0x2b1   : > { %2414 = vmatpush3.bf16.msra.mxu0 %v2413_v44  ;;  %1789 = vmatprep.mubr.f32.mxu1 %v1480_v56  ;;  %v1511_v12 = vsel %vm1429_vm0, %v1480_v56, 0.0  ;;  %v1618_v44 = vld [vmem:[#allocation9 + $0x2d8] sm:$0xff]  ;;  %v2459_v46 = vpack.c.bf16 %v1648_v38, %v1647_v37  ;;  %v1601_v56 = vld [vmem:[#allocation9 + $0x250] sm:$0xff] }
 0x2b2   : > { %v1510_v7 = vadd.f32 %v1509_v2, %v1508_v62  ;;  %1859 = vmatprep.mubr.f32.mxu0 %v1496_v63  ;;  %1790 = vmatmul.mubr.f32.vlgmr.msra.gmra.mrb[0].mxu1 %v1478_v45  ;;  %v1519_v43 = vsel %vm1429_vm0, %v1497_v8, 0.0  ;;  %v2431_v55 = vpack.c.bf16 %v1618_v44, %v1617_v51  ;;  %v1620_v62 = vld [vmem:[#allocation9 + $0x2e8] sm:$0xff]  ;;  %v2463_v63 = vpack.c.bf16 %v1650_v54, %v1649_v53  ;;  %v1651_v2 = vld [vmem:[#allocation9 + $0x3e0] sm:$0xff] }
 0x2b3   : > { %2446 = vmatpush3.bf16.msra.mxu1 %v2445_v4  ;;  %2416 = vmatprep.subr.bf16.mxu0 %v2415_v58  ;;  %v1632_v4 = vld [vmem:[#allocation9 + $0x348] sm:$0xff]  ;;  %v1602_v58 = vld [vmem:[#allocation9 + $0x258] sm:$0xff]  ;;  %v2435_v5 = vpack.c.bf16 %v1620_v62, %v1619_v61 }
 0x2b4   : > { %v1512_v16 = vadd.f32 %v1511_v12, %v1510_v7  ;;  %1929 = vmatprep.mubr.f32.mxu1 %v1497_v8  ;;  %2448 = vmatprep.subr.bf16.mxu1 %v2447_v0  ;;  %v2461_v59 = vpack.c.bf16 %v1632_v4, %v1631_v47  ;;  %v1633_v0 = vld [vmem:[#allocation9 + $0x350] sm:$0xff]  ;;  %v2433_v23 = vpack.c.bf16 %v1602_v58, %v1601_v56  ;;  %v1604_v7 = vld [vmem:[#allocation9 + $0x268] sm:$0xff]  ;;  %v1635_v12 = vld [vmem:[#allocation9 + $0x360] sm:$0xff] }
 0x2b5   : > { %2418 = vmatpush3.bf16.msra.mxu0 %v2417_v3  ;;  %v1652_v3 = vld [vmem:[#allocation9 + $0x3e8] sm:$0xff]  ;;  %v2465_v8 = vpack.c.bf16 %v1634_v1, %v1633_v0  ;;  %v2437_v14 = vpack.c.bf16 %v1604_v7, %v1603_v6 }
 0x2b6   : > { %v1514_v26 = vadd.f32 %v1513_v20, %v1512_v16  ;;  %2420 = vmatprep.subr.bf16.mxu0 %v2419_v9  ;;  %v1621_v9 = vld [vmem:[#allocation9 + $0x2f0] sm:$0xff]  ;;  %v2467_v11 = vpack.c.bf16 %v1652_v3, %v1651_v2  ;;  %v1654_v16 = vld [vmem:[#allocation9 + $0x3f8] sm:$0xff] }
 0x2b7   : > { %2450 = vmatpush3.bf16.msra.mxu1 %v2449_v13  ;;  %v1636_v13 = vld [vmem:[#allocation9 + $0x368] sm:$0xff] }
 0x2b8   : > { %2452 = vmatprep.subr.bf16.mxu1 %v2451_v17  ;;  %v1516_v34 = vadd.f32 %v1515_v30, %v1514_v26  ;;  %v2439_v17 = vpack.c.bf16 %v1622_v10, %v1621_v9  ;;  %v2469_v20 = vpack.c.bf16 %v1636_v13, %v1635_v12  ;;  %v2441_v26 = vpack.c.bf16 %v1606_v19, %v1605_v18 }
 0x2b9   : > { %2422 = vmatpush3.bf16.msra.mxu0 %v2421_v21  ;;  %v2471_v21 = vpack.c.bf16 %v1654_v16, %v1653_v15 }
 0x2ba   : > { %2424 = vmatprep.subr.bf16.mxu0 %v2423_v27  ;;  %v1518_v39 = vadd.f32 %v1517_v36, %v1516_v34  ;;  %v2473_v27 = vpack.c.bf16 %v1638_v25, %v1637_v24 }
 0x2bb   : > { %2454 = vmatpush3.bf16.msra.mxu1 %v2453_v57 }
 0x2bc   : > { %2456 = vmatprep.subr.bf16.mxu1 %v2455_v22  ;;  %v1520_v45 = vadd.f32 %v1519_v43, %v1518_v39 }
 0x2bd   : > { %2426 = vmatpush3.bf16.msra.mxu0 %v2425_v35 }
 0x2be   : > { %1521 = vadd.xlane.f32.xlu0 %v1520_v45  ;;  %2428 = vmatprep.subr.bf16.mxu0 %v2427_v40 }
 0x2bf   : > { %2458 = vmatpush3.bf16.msra.mxu1 %v2457_v49 }
 0x2c0   : > { %2460 = vmatprep.subr.bf16.mxu1 %v2459_v46 }
 0x2c1   : > { %2430 = vmatpush3.bf16.msra.mxu0 %v2429_v52 }
 0x2c2   : > { %2432 = vmatprep.subr.bf16.mxu0 %v2431_v55 }
 0x2c3   : > { %2462 = vmatpush3.bf16.msra.mxu1 %v2461_v59 }
 0x2c4   : > { %2464 = vmatprep.subr.bf16.mxu1 %v2463_v63 }
 0x2c5   : > { %2434 = vmatpush3.bf16.msra.mxu0 %v2433_v23 }
 0x2c6   : > { %2436 = vmatprep.subr.bf16.mxu0 %v2435_v5 }
 0x2c7   : > { %2466 = vmatpush3.bf16.msra.mxu1 %v2465_v8 }
 0x2c8   : > { %2468 = vmatprep.subr.bf16.mxu1 %v2467_v11 }
 0x2c9   : > { %2438 = vmatpush3.bf16.msra.mxu0 %v2437_v14 }
 0x2ca   : > { %2440 = vmatprep.subr.bf16.mxu0 %v2439_v17 }
 0x2cb   : > { %2470 = vmatpush3.bf16.msra.mxu1 %v2469_v20 }
 0x2cc   : > { %2472 = vmatprep.subr.bf16.mxu1 %v2471_v21 }
 0x2cd   : > { %2442 = vmatpush3.bf16.msra.mxu0 %v2441_v26 }
 0x2cf   : > { %2474 = vmatpush3.bf16.msra.mxu1 %v2473_v27 }
 0x2d0   : > { %1860 = vmatmul.mubr.f32.vlgmr.msra.gmra.mrb[2].mxu0 %v3249_v48 }
 0x2d2   : > { %1930 = vmatmul.mubr.f32.vlgmr.msra.gmra.mrb[2].mxu1 %v3253_v50 }
 0x34b   : > { %v1522_v32 = vpop.xlane.xlu0 %1521 }
 0x34c   : > { %2575 = vrcp.f32 %v1522_v32 }
 0x356   : > { %v2576_v33 = vpop.eup %2575 }
 0x357   : > { %v1524_v34 = vmul.f32 %v2576_v33, %v1522_v32 }
 0x359   : > { %v1525_v37 = vsub.f32 2.0, %v1524_v34 }
 0x35b   : > { %v1526_v50 = vmul.f32 %v2576_v33, %v1525_v37 }
 0x383   : > { %v2239_v28 = vpop.f32.mrb[0].mxu0 }
 0x384   : > { %v2240_v29 = vpop.f32.mrb[1].mxu0 }
 0x385   : > { %v2241_v30 = vadd.f32 %v2240_v29, %v2239_v28  ;;  %v2274_v57 = vpop.f32.mrb[0].mxu1 }
 0x386   : > { %v2275_v60 = vpop.f32.mrb[1].mxu1 }
 0x387   : > { %v2276_v31 = vadd.f32 %v2275_v60, %v2274_v57 }
 0x389   : > { %v1792_v22 = vadd.f32 %v2276_v31, %v2241_v30 }
 0x3a3   : > { %v2309_v35 = vpop.f32.mrb[2].mxu0 }
 0x3a4   : > { %v2310_v36 = vpop.f32.mrb[3].mxu0 }
 0x3a5   : > { %v2311_v38 = vadd.f32 %v2310_v36, %v2309_v35  ;;  %v2344_v39 = vpop.f32.mrb[2].mxu1 }
 0x3a6   : > { %v2345_v40 = vpop.f32.mrb[3].mxu1 }
 0x3a7   : > { %v1862_v48 = vadd.f32 %v2311_v38, %v1792_v22  ;;  %v2346_v41 = vadd.f32 %v2345_v40, %v2344_v39 }
 0x3a9   : > { %v1932_v42 = vadd.f32 %v2346_v41, %v1862_v48 }
 0x3ab   : > { %v1935_v49 = vmul.f32 %v1932_v42, %v1526_v50 }
 0x3ad   : > { %1936 = vst [vmem:[#allocation11] sm:$0x3] %v1935_v49 }
 0x3ae PF: > { %p2510_p2 = scmp.eq.s32.totalorder %s2854_s21, 3  ;;  %s2799_s18 = smov [#allocation11]  }
 0x3af   : > { %s1946_s22 = sshll.u32 %s2799_s18, 4  ;;  %s1947_s22 = int_to_ptr.vmem [resolvable:$true] %s1946_s22 }
 0x3b0   : > { %s2693_s23 = scalar_lea.vmem %s1947_s22, 32  ;;  %p2700_p8 = scmp.lt.s32.totalorder %s1947_s22, %s1947_s22 }
 0x3b1   : > { %p2694_p3 = scmp.ne.s32.totalorder %s1947_s22, %s2693_s23  ;;  %p2701_p1 = scmp.lt.s32.totalorder %s2693_s23, %s2693_s23 }
 0x3b3   : > { %p2695_p0 = pnand %p2694_p3, %p2510_p2  ;;  %p2702_p12 = por %p2701_p1, %p2700_p8 }
 0x3b5   : > { %p2696_p6 = pneg %p2695_p0 }
 0x3b7   : > { %p2703_p9 = pnand %p2702_p12, %p2696_p6 }
 0x3b9   : > { %2706 = shalt.err (!%p2703_p9)
}
 0x3ba   : > { %s2707_s5 = scalar_lea.hbm %s3316_s4, 32 }
 0x3bb   : > { %p2708_p7 = scmp.ne.s32.totalorder %s3316_s4, %s2707_s5  ;;  %p2713_p10 = scmp.lt.u32.totalorder %s2707_s5, %s3316_s4 }
 0x3bd   : > { %p2709_p4 = pnand %p2708_p7, %p2510_p2 }
 0x3bf   : > { %p2710_p5 = pneg %p2709_p4 }
 0x3c1   : > { %p2715_p11 = pnand %p2713_p10, %p2710_p5 }
 0x3c3   : > { %2718 = shalt.err (!%p2715_p11)
}
 0x3c4   : > { %2488 = dma.vmem_to_hbm [thread:$0]  (%p2510_p2), %s1947_s22, 32, %s3316_s4, [#allocation5]  }
 0x3c5   : > { %2760 = dma.done.wait (%p2510_p2), [#allocation5], 32  }
 0x3c6   : > { %2762 = vsyncadd (%p2510_p2), [#allocation5], 4294967264 }
 0x3c7 PF: > { %s22_s20 = sadd.s32 1, %s2785_s20   ;;  %s3330_s15 = smov %s2769_s16 }
 0x3c8   : > { %p19_p13 = scmp.ge.s32.totalorder %s22_s20, 6   ;;  %s3331_s16 = smov %s2773_s17 }
 0x3c9   : > { %s3332_s17 = smov %s2943_s13  ;;  %s3333_s18 = smov %s2781_s19 }
 0x3ca   : > { %s3334_s19 = smov %s3336_s9  ;;  %21 = sbr.rel (!%p19_p13) target bundleno = 8 (0x8), region = 103 }
 0x3d1   :  { %1959 = vsyncpa [#allocation4], 1 }
 0x3d2   :  { %1961 = vsyncpa [#allocation4 + $0x1], 1 }
 0x3d3   :  { %1962 = vsyncpa [#allocation7], 1 }
 0x3d4   :  { %1964 = vsyncpa [#allocation7 + $0x1], 1 }
 0x3d5   :  { %1965 = vsyncpa [#allocation10], 1 }
 0x3d6   :  { %1966 = vsyncpa [#allocation5], 1 }
 0x3d7   :  { %1968 = vsyncpa [#allocation5 + $0x1], 1 }

</bundles_post_ra>
